<compile_context>
chip_gen: v7x
topology: tpu7x:2x2x1
jax: 0.10.0
libtpu: 0.0.40
codegen_flags: <defaults>
</compile_context>

<pallas_src>
import functools

import jax
import jax.numpy as jnp
from jax import lax
from jax.experimental import pallas as pl
from jax.experimental.pallas import tpu as pltpu

LANE = 128


# ----------------------------- Pallas kernel ------------------------------ #
def _bottleneck_kernel(x_ref, w1_ref, b1_ref, w2_ref, b2_ref, w3ws_ref,
                       b3bs_ref, o_ref, *, cpk, img_h):
    _, TH, W, Cout_p = o_ref.shape
    Cin_p = x_ref.shape[3]
    Cmid_p = w1_ref.shape[1]
    K3p = w2_ref.shape[1]
    rows = TH + 2                           # TH output rows + 1-row dy halo

    r = pl.program_id(1)
    row0 = r * TH                           # start row in the row-padded image

    # x window with halo: padded-image rows [row0, row0 + TH + 2).
    xw = x_ref[0, pl.ds(row0, rows), :, :]                    # (rows, W, Cin_p) bf16

    # ---- 1x1 conv1 + folded BN1 + ReLU over the TH+2 halo rows --------------
    h1 = jnp.dot(xw.reshape(rows * W, Cin_p), w1_ref[...],
                 preferred_element_type=jnp.float32) + b1_ref[...]
    h1 = jnp.maximum(h1, 0.0).reshape(rows, W, Cmid_p)        # f32

    # Zero h1 on halo rows outside the image (conv2's zero padding in h1 space).
    abs_row = lax.broadcasted_iota(jnp.int32, (rows, 1, 1), 0) + row0
    h1 = jnp.where((abs_row >= 1) & (abs_row <= img_h), h1, 0.0)

    # ---- 3x3 conv: tight dx packing (left|center|right @ cpk lanes each) ----
    h1s = h1[..., :cpk]                                       # (rows, W, cpk) f32
    zcol = jnp.zeros((rows, 1, cpk), jnp.float32)
    left = jnp.concatenate([zcol, h1s[:, :W - 1, :]], axis=1)   # in[., w-1]
    right = jnp.concatenate([h1s[:, 1:, :], zcol], axis=1)      # in[., w+1]
    parts = [left, h1s, right]
    if K3p > 3 * cpk:
        parts.append(jnp.zeros((rows, W, K3p - 3 * cpk), jnp.float32))
    slab = jnp.concatenate(parts, axis=-1).astype(jnp.bfloat16)  # (rows, W, K3p)

    # Three dy-tap matmuls; accumulator initialized from the first tap.
    acc = jnp.dot(slab[0:TH].reshape(TH * W, K3p), w2_ref[0],
                  preferred_element_type=jnp.float32)
    for dy in (1, 2):                                          # static unroll
        acc = acc + jnp.dot(slab[dy:dy + TH].reshape(TH * W, K3p), w2_ref[dy],
                            preferred_element_type=jnp.float32)
    h2 = jnp.maximum(acc + b2_ref[...], 0.0).astype(jnp.bfloat16)  # (TH*W, Cmid_p)

    # ---- 1x1 conv3 + 1x1 shortcut fused: [h2 | x] @ [w3; ws], residual in MXU
    xc = xw[1:TH + 1].reshape(TH * W, Cin_p)                   # center rows, bf16
    out = jnp.dot(jnp.concatenate([h2, xc], axis=-1), w3ws_ref[...],
                  preferred_element_type=jnp.float32) + b3bs_ref[...]
    out = jnp.maximum(out, 0.0)
    o_ref[0] = out.reshape(TH, W, Cout_p).astype(o_ref.dtype)


# ------------------------------- wrapper ----------------------------------- #
def _fold_bn(gamma, beta, mean, var, eps=1e-5):
    scale = (gamma / jnp.sqrt(var + eps)).astype(jnp.float32)
    bias = (beta - mean * scale).astype(jnp.float32)
    return scale, bias


def _round_up(v, m):
    return (v + m - 1) // m * m


def _pad2(a, rows, cols):
    return jnp.pad(a, ((0, rows - a.shape[0]), (0, cols - a.shape[1])))


def _pick_th(h, target=8):
    for t in range(min(target, h), 0, -1):
        if h % t == 0:
            return t
    return h


def _chip_vmem_bytes():
    try:
        return int(pltpu.get_tpu_info().vmem_capacity_bytes)
    except Exception:
        return 64 << 20          # conservative (v7x per-TensorCore VMEM)


def bottleneck_forward(x_nhwc, params):
    """x_nhwc: (N, H, W, Cin) float32.  Returns (N, H, W, 4*out_channels) bf16."""
    N, H, W, Cin = x_nhwc.shape
    Cmid = params["conv1_w"].shape[0]
    Cout = params["conv3_w"].shape[0]

    Cin_p, Cmid_p, Cout_p = (_round_up(c, LANE) for c in (Cin, Cmid, Cout))
    Cpk = _round_up(Cmid, 8)                 # per-dx block width inside packed K
    K3p = _round_up(3 * Cpk, LANE)           # packed K for conv2 (tight, not 3*Cmid_p)
    TH = _pick_th(H)                         # rows per grid step (divides H)
    nr = H // TH

    s1, b1 = _fold_bn(*params["bn1"])
    s2, b2 = _fold_bn(*params["bn2"])
    s3, b3 = _fold_bn(*params["bn3"])
    ss, bs = _fold_bn(*params["bns"])

    # 1x1 convs as matmuls, BN scales folded into the weights.
    w1 = params["conv1_w"][:, :, 0, 0].T * s1[None, :]              # (Cin, Cmid)
    w3 = params["conv3_w"][:, :, 0, 0].T * s3[None, :]              # (Cmid, Cout)
    ws = params["sc_w"][:, :, 0, 0].T * ss[None, :]                 # (Cin, Cout)

    w1p = _pad2(w1, Cin_p, Cmid_p).astype(jnp.bfloat16)
    b1p = jnp.pad(b1, (0, Cmid_p - Cmid)).reshape(1, -1)

    # conv2: per-dy (K3p, Cmid_p) with dx blocks of width Cpk (left|center|right).
    w2_rows = []
    for dy in range(3):
        blocks = [jnp.pad(params["conv2_w"][:, :, dy, dx].T * s2[None, :],
                          ((0, Cpk - Cmid), (0, Cmid_p - Cmid))) for dx in range(3)]
        w2_rows.append(jnp.pad(jnp.concatenate(blocks, axis=0),
                               ((0, K3p - 3 * Cpk), (0, 0))))
    w2 = jnp.stack(w2_rows, axis=0).astype(jnp.bfloat16)            # (3, K3p, Cmid_p)
    b2p = jnp.pad(b2, (0, Cmid_p - Cmid)).reshape(1, -1)

    # conv3 + shortcut stacked along K: [w3; ws], combined bias b3 + bs.
    w3ws = jnp.concatenate([_pad2(w3, Cmid_p, Cout_p),
                            _pad2(ws, Cin_p, Cout_p)], axis=0).astype(jnp.bfloat16)
    b3bs = jnp.pad(b3 + bs, (0, Cout_p - Cout)).reshape(1, -1)

    # Input: 1 zero row of halo on top/bottom, lane-padded channels, bf16 MXU operand.
    x_p = jnp.pad(x_nhwc, ((0, 0), (1, 1), (0, 0), (0, Cin_p - Cin))).astype(jnp.bfloat16)

    full = lambda a: pl.BlockSpec(a.shape, lambda n, r: (0,) * a.ndim)

    # VMEM budget: double-buffered x/out blocks + weights + live in-kernel values.
    block_bytes = (
        2 * ((H + 2) * W * Cin_p * 2 + TH * W * Cout_p * 2)
        + 2 * (w1p.size * 2 + w2.size * 2 + w3ws.size * 2
               + (b1p.size + b2p.size + b3bs.size) * 4)
        + (TH + 2) * W * (Cmid_p * 4 + K3p * 6)
        + TH * W * (Cmid_p * 4 + Cout_p * 4 + (Cmid_p + Cin_p) * 2))
    vmem_limit = int(max(min(block_bytes + (16 << 20),
                             (3 * _chip_vmem_bytes()) // 4), 8 << 20))

    # True (unpadded) cost so XLA schedules around the call sensibly.
    flops = 2 * N * H * W * (Cin * Cmid + 9 * Cmid * Cmid + Cmid * Cout + Cin * Cout)
    bytes_accessed = (x_p.size * 2 + N * H * W * Cout_p * 2
                      + (w1p.size + w2.size + w3ws.size) * 2
                      + (b1p.size + b2p.size + b3bs.size) * 4)

    grid_spec = pltpu.PrefetchScalarGridSpec(
        num_scalar_prefetch=0,
        grid=(N, nr),
        in_specs=[
            # whole (row-padded) image stays resident while r advances
            pl.BlockSpec((1, H + 2, W, Cin_p), lambda n, r: (n, 0, 0, 0)),
            full(w1p), full(b1p), full(w2), full(b2p), full(w3ws), full(b3bs),
        ],
        out_specs=pl.BlockSpec((1, TH, W, Cout_p), lambda n, r: (n, r, 0, 0)),
    )

    out_p = pl.pallas_call(
        functools.partial(_bottleneck_kernel, cpk=Cpk, img_h=H),
        out_shape=jax.ShapeDtypeStruct((N, H, W, Cout_p), jnp.bfloat16),
        grid_spec=grid_spec,
        compiler_params=pltpu.CompilerParams(
            dimension_semantics=("parallel", "parallel"),
            vmem_limit_bytes=vmem_limit),
        cost_estimate=pl.CostEstimate(flops=flops, transcendentals=0,
                                      bytes_accessed=int(bytes_accessed)),
    )(x_p, w1p, b1p, w2, b2p, w3ws, b3bs)

    return out_p if Cout == Cout_p else out_p[..., :Cout]


# -------------------------- pure-JAX reference ----------------------------- #
def _conv_nhwc(x, w_oihw, padding):
    w_hwio = jnp.transpose(w_oihw, (2, 3, 1, 0))
    return lax.conv_general_dilated(
        x, w_hwio, window_strides=(1, 1), padding=padding,
        dimension_numbers=("NHWC", "HWIO", "NHWC"))


def _bn_ref(x, gamma, beta, mean, var, eps=1e-5):
    return (x - mean) / jnp.sqrt(var + eps) * gamma + beta


def bottleneck_ref(x_nhwc, params):
    h = _conv_nhwc(x_nhwc, params["conv1_w"], [(0, 0), (0, 0)])
    h = jnp.maximum(_bn_ref(h, *params["bn1"]), 0.0)
    h = _conv_nhwc(h, params["conv2_w"], [(1, 1), (1, 1)])
    h = jnp.maximum(_bn_ref(h, *params["bn2"]), 0.0)
    h = _conv_nhwc(h, params["conv3_w"], [(0, 0), (0, 0)])
    h = _bn_ref(h, *params["bn3"])
    s = _conv_nhwc(x_nhwc, params["sc_w"], [(0, 0), (0, 0)])
    s = _bn_ref(s, *params["bns"])
    return jnp.maximum(h + s, 0.0)


# --------------------------------- main ------------------------------------ #
if __name__ == "__main__":
    key = jax.random.PRNGKey(0)
    ks = jax.random.split(key, 16)

    N, Cin, H, W = 2, 4, 16, 16          # x: NCHW like the PyTorch module
    out_channels = 4
    Cmid, Cout = out_channels, out_channels * 4   # first=True bottleneck

    def bn_params(k, c):
        k1, k2, k3, k4 = jax.random.split(k, 4)
        gamma = jax.random.uniform(k1, (c,), jnp.float32, 0.5, 1.5)
        beta = 0.1 * jax.random.normal(k2, (c,), jnp.float32)
        mean = 0.1 * jax.random.normal(k3, (c,), jnp.float32)
        var = jax.random.uniform(k4, (c,), jnp.float32, 0.5, 1.5)
        return (gamma, beta, mean, var)

    params = {
        "conv1_w": 0.2 * jax.random.normal(ks[0], (Cmid, Cin, 1, 1), jnp.float32),
        "conv2_w": 0.2 * jax.random.normal(ks[1], (Cmid, Cmid, 3, 3), jnp.float32),
        "conv3_w": 0.2 * jax.random.normal(ks[2], (Cout, Cmid, 1, 1), jnp.float32),
        "sc_w":    0.2 * jax.random.normal(ks[3], (Cout, Cin, 1, 1), jnp.float32),
        "bn1": bn_params(ks[4], Cmid),
        "bn2": bn_params(ks[5], Cmid),
        "bn3": bn_params(ks[6], Cout),
        "bns": bn_params(ks[7], Cout),
    }

    x_nchw = jax.random.normal(ks[8], (N, Cin, H, W), jnp.float32)
    x_nhwc = jnp.transpose(x_nchw, (0, 2, 3, 1))   # NCHW -> NHWC

    out = jax.block_until_ready(bottleneck_forward(x_nhwc, params))
    ref = jax.block_until_ready(bottleneck_ref(x_nhwc, params))

    assert out.shape == (N, H, W, Cout), out.shape
    # bf16 matmul operands + bf16 output (f32 accumulation) -> loosened tolerance.
    outf = out.astype(jnp.float32)
    assert jnp.allclose(outf, ref, atol=5e-2, rtol=5e-2), \
        float(jnp.max(jnp.abs(outf - ref)))

    print("KERNEL_OK")
</pallas_src>

<mosaic_0001>
module attributes {stable_mosaic.version = 11 : i64} {
  func.func @_bottleneck_kernel(%arg0: i32, %arg1: i32, %arg2: memref<1x18x16x128xbf16, #tpu.memory_space<vmem>>, %arg3: memref<128x128xbf16, #tpu.memory_space<vmem>>, %arg4: memref<1x128xf32, #tpu.memory_space<vmem>>, %arg5: memref<3x128x128xbf16, #tpu.memory_space<vmem>>, %arg6: memref<1x128xf32, #tpu.memory_space<vmem>>, %arg7: memref<256x128xbf16, #tpu.memory_space<vmem>>, %arg8: memref<1x128xf32, #tpu.memory_space<vmem>>, %arg9: memref<1x8x16x128xbf16, #tpu.memory_space<vmem>>) attributes {dimension_semantics = [#tpu.dimension_semantics<parallel>, #tpu.dimension_semantics<parallel>], iteration_bounds = array<i64: 2, 2>, scalar_prefetch = 0 : i64, scratch_operands = 0 : i64, tpu.core_type = #tpu.core_type<tc>, window_params = [{transform_indices = @transform_0, window_bounds = array<i64: 1, 18, 16, 128>}, {pipeline_mode = #tpu.pipeline_mode<synchronous>, transform_indices = @transform_1, window_bounds = array<i64: 128, 128>}, {pipeline_mode = #tpu.pipeline_mode<synchronous>, transform_indices = @transform_2, window_bounds = array<i64: 1, 128>}, {pipeline_mode = #tpu.pipeline_mode<synchronous>, transform_indices = @transform_3, window_bounds = array<i64: 3, 128, 128>}, {pipeline_mode = #tpu.pipeline_mode<synchronous>, transform_indices = @transform_4, window_bounds = array<i64: 1, 128>}, {pipeline_mode = #tpu.pipeline_mode<synchronous>, transform_indices = @transform_5, window_bounds = array<i64: 256, 128>}, {pipeline_mode = #tpu.pipeline_mode<synchronous>, transform_indices = @transform_6, window_bounds = array<i64: 1, 128>}, {transform_indices = @transform_7, window_bounds = array<i64: 1, 8, 16, 128>}]} {
    %c8_i32 = arith.constant 8 : i32
    %0 = arith.muli %arg1, %c8_i32 : i32
    %c0 = arith.constant 0 : index
    %1 = arith.index_cast %0 : i32 to index
    %c0_0 = arith.constant 0 : index
    %c0_1 = arith.constant 0 : index
    %2 = vector.load %arg2[%c0, %1, %c0_0, %c0_1] : memref<1x18x16x128xbf16, #tpu.memory_space<vmem>>, vector<1x10x16x128xbf16>
    %3 = vector.shape_cast %2 : vector<1x10x16x128xbf16> to vector<10x16x128xbf16>
    %4 = vector.shape_cast %3 : vector<10x16x128xbf16> to vector<160x128xbf16>
    %c0_2 = arith.constant 0 : index
    %c0_3 = arith.constant 0 : index
    %5 = vector.load %arg3[%c0_2, %c0_3] : memref<128x128xbf16, #tpu.memory_space<vmem>>, vector<128x128xbf16>
    %cst = arith.constant dense<0.000000e+00> : vector<160x128xf32>
    %6 = tpu.matmul %4, %5, %cst {dimension_numbers = #tpu.dot_dimension_numbers<[1], [0], [0], [1], [0, 0, 1, 1], [], []>} : vector<160x128xbf16>, vector<128x128xbf16>, vector<160x128xf32> -> vector<160x128xf32>
    %c0_4 = arith.constant 0 : index
    %c0_5 = arith.constant 0 : index
    %7 = vector.load %arg4[%c0_4, %c0_5] : memref<1x128xf32, #tpu.memory_space<vmem>>, vector<1x128xf32>
    %8 = vector.broadcast %7 : vector<1x128xf32> to vector<160x128xf32>
    %9 = arith.addf %6, %8 : vector<160x128xf32>
    %cst_6 = arith.constant 0.000000e+00 : f32
    %10 = vector.broadcast %cst_6 : f32 to vector<160x128xf32>
    %11 = arith.maximumf %9, %10 : vector<160x128xf32>
    %12 = vector.shape_cast %11 : vector<160x128xf32> to vector<10x16x128xf32>
    %13 = tpu.iota {dimensions = array<i32: 0>} : vector<10x1x1xi32>
    %14 = vector.broadcast %0 : i32 to vector<10x1x1xi32>
    %15 = arith.addi %13, %14 : vector<10x1x1xi32>
    %c1_i32 = arith.constant 1 : i32
    %16 = vector.broadcast %c1_i32 : i32 to vector<10x1x1xi32>
    %17 = arith.cmpi sge, %15, %16 : vector<10x1x1xi32>
    %c16_i32 = arith.constant 16 : i32
    %18 = vector.broadcast %c16_i32 : i32 to vector<10x1x1xi32>
    %19 = arith.cmpi sle, %15, %18 : vector<10x1x1xi32>
    %20 = arith.andi %17, %19 : vector<10x1x1xi1>
    %cst_7 = arith.constant 0.000000e+00 : f32
    %21 = vector.shape_cast %20 : vector<10x1x1xi1> to vector<10x1x1xi1>
    %22 = vector.broadcast %21 : vector<10x1x1xi1> to vector<10x16x128xi1>
    %23 = vector.broadcast %cst_7 : f32 to vector<10x16x128xf32>
    %24 = arith.select %22, %12, %23 : vector<10x16x128xi1>, vector<10x16x128xf32>
    %25 = vector.extract_strided_slice %24 {offsets = [0, 0, 0], sizes = [10, 16, 8], strides = [1, 1, 1]} : vector<10x16x128xf32> to vector<10x16x8xf32>
    %cst_8 = arith.constant 0.000000e+00 : f32
    %26 = vector.broadcast %cst_8 : f32 to vector<10x1x8xf32>
    %27 = vector.extract_strided_slice %25 {offsets = [0, 0, 0], sizes = [10, 15, 8], strides = [1, 1, 1]} : vector<10x16x8xf32> to vector<10x15x8xf32>
    %28 = tpu.concatenate %26, %27 in 1 : vector<10x1x8xf32>, vector<10x15x8xf32> -> vector<10x16x8xf32>
    %29 = vector.extract_strided_slice %25 {offsets = [0, 1, 0], sizes = [10, 15, 8], strides = [1, 1, 1]} : vector<10x16x8xf32> to vector<10x15x8xf32>
    %30 = tpu.concatenate %29, %26 in 1 : vector<10x15x8xf32>, vector<10x1x8xf32> -> vector<10x16x8xf32>
    %cst_9 = arith.constant 0.000000e+00 : f32
    %31 = vector.broadcast %cst_9 : f32 to vector<10x16x104xf32>
    %32 = tpu.concatenate %28, %25, %30, %31 in 2 : vector<10x16x8xf32>, vector<10x16x8xf32>, vector<10x16x8xf32>, vector<10x16x104xf32> -> vector<10x16x128xf32>
    %33 = arith.truncf %32 : vector<10x16x128xf32> to vector<10x16x128xbf16>
    %34 = vector.extract_strided_slice %33 {offsets = [0, 0, 0], sizes = [8, 16, 128], strides = [1, 1, 1]} : vector<10x16x128xbf16> to vector<8x16x128xbf16>
    %35 = vector.shape_cast %34 : vector<8x16x128xbf16> to vector<128x128xbf16>
    %c0_10 = arith.constant 0 : index
    %c0_11 = arith.constant 0 : index
    %c0_12 = arith.constant 0 : index
    %36 = vector.load %arg5[%c0_10, %c0_11, %c0_12] : memref<3x128x128xbf16, #tpu.memory_space<vmem>>, vector<1x128x128xbf16>
    %37 = vector.shape_cast %36 : vector<1x128x128xbf16> to vector<128x128xbf16>
    %cst_13 = arith.constant dense<0.000000e+00> : vector<128x128xf32>
    %38 = tpu.matmul %35, %37, %cst_13 {dimension_numbers = #tpu.dot_dimension_numbers<[1], [0], [0], [1], [0, 0, 1, 1], [], []>} : vector<128x128xbf16>, vector<128x128xbf16>, vector<128x128xf32> -> vector<128x128xf32>
    %39 = vector.extract_strided_slice %33 {offsets = [1, 0, 0], sizes = [8, 16, 128], strides = [1, 1, 1]} : vector<10x16x128xbf16> to vector<8x16x128xbf16>
    %40 = vector.shape_cast %39 : vector<8x16x128xbf16> to vector<128x128xbf16>
    %c1 = arith.constant 1 : index
    %c0_14 = arith.constant 0 : index
    %c0_15 = arith.constant 0 : index
    %41 = vector.load %arg5[%c1, %c0_14, %c0_15] : memref<3x128x128xbf16, #tpu.memory_space<vmem>>, vector<1x128x128xbf16>
    %42 = vector.shape_cast %41 : vector<1x128x128xbf16> to vector<128x128xbf16>
    %cst_16 = arith.constant dense<0.000000e+00> : vector<128x128xf32>
    %43 = tpu.matmul %40, %42, %cst_16 {dimension_numbers = #tpu.dot_dimension_numbers<[1], [0], [0], [1], [0, 0, 1, 1], [], []>} : vector<128x128xbf16>, vector<128x128xbf16>, vector<128x128xf32> -> vector<128x128xf32>
    %44 = arith.addf %38, %43 : vector<128x128xf32>
    %45 = vector.extract_strided_slice %33 {offsets = [2, 0, 0], sizes = [8, 16, 128], strides = [1, 1, 1]} : vector<10x16x128xbf16> to vector<8x16x128xbf16>
    %46 = vector.shape_cast %45 : vector<8x16x128xbf16> to vector<128x128xbf16>
    %c2 = arith.constant 2 : index
    %c0_17 = arith.constant 0 : index
    %c0_18 = arith.constant 0 : index
    %47 = vector.load %arg5[%c2, %c0_17, %c0_18] : memref<3x128x128xbf16, #tpu.memory_space<vmem>>, vector<1x128x128xbf16>
    %48 = vector.shape_cast %47 : vector<1x128x128xbf16> to vector<128x128xbf16>
    %cst_19 = arith.constant dense<0.000000e+00> : vector<128x128xf32>
    %49 = tpu.matmul %46, %48, %cst_19 {dimension_numbers = #tpu.dot_dimension_numbers<[1], [0], [0], [1], [0, 0, 1, 1], [], []>} : vector<128x128xbf16>, vector<128x128xbf16>, vector<128x128xf32> -> vector<128x128xf32>
    %50 = arith.addf %44, %49 : vector<128x128xf32>
    %c0_20 = arith.constant 0 : index
    %c0_21 = arith.constant 0 : index
    %51 = vector.load %arg6[%c0_20, %c0_21] : memref<1x128xf32, #tpu.memory_space<vmem>>, vector<1x128xf32>
    %52 = vector.broadcast %51 : vector<1x128xf32> to vector<128x128xf32>
    %53 = arith.addf %50, %52 : vector<128x128xf32>
    %cst_22 = arith.constant 0.000000e+00 : f32
    %54 = vector.broadcast %cst_22 : f32 to vector<128x128xf32>
    %55 = arith.maximumf %53, %54 : vector<128x128xf32>
    %56 = arith.truncf %55 : vector<128x128xf32> to vector<128x128xbf16>
    %57 = vector.extract_strided_slice %3 {offsets = [1, 0, 0], sizes = [8, 16, 128], strides = [1, 1, 1]} : vector<10x16x128xbf16> to vector<8x16x128xbf16>
    %58 = vector.shape_cast %57 : vector<8x16x128xbf16> to vector<128x128xbf16>
    %59 = tpu.concatenate %56, %58 in 1 : vector<128x128xbf16>, vector<128x128xbf16> -> vector<128x256xbf16>
    %c0_23 = arith.constant 0 : index
    %c0_24 = arith.constant 0 : index
    %60 = vector.load %arg7[%c0_23, %c0_24] : memref<256x128xbf16, #tpu.memory_space<vmem>>, vector<256x128xbf16>
    %cst_25 = arith.constant dense<0.000000e+00> : vector<128x128xf32>
    %61 = tpu.matmul %59, %60, %cst_25 {dimension_numbers = #tpu.dot_dimension_numbers<[1], [0], [0], [1], [0, 0, 1, 1], [], []>} : vector<128x256xbf16>, vector<256x128xbf16>, vector<128x128xf32> -> vector<128x128xf32>
    %c0_26 = arith.constant 0 : index
    %c0_27 = arith.constant 0 : index
    %62 = vector.load %arg8[%c0_26, %c0_27] : memref<1x128xf32, #tpu.memory_space<vmem>>, vector<1x128xf32>
    %63 = vector.broadcast %62 : vector<1x128xf32> to vector<128x128xf32>
    %64 = arith.addf %61, %63 : vector<128x128xf32>
    %cst_28 = arith.constant 0.000000e+00 : f32
    %65 = vector.broadcast %cst_28 : f32 to vector<128x128xf32>
    %66 = arith.maximumf %64, %65 : vector<128x128xf32>
    %67 = vector.shape_cast %66 : vector<128x128xf32> to vector<8x16x128xf32>
    %68 = arith.truncf %67 : vector<8x16x128xf32> to vector<8x16x128xbf16>
    %c0_29 = arith.constant 0 : index
    %c0_30 = arith.constant 0 : index
    %c0_31 = arith.constant 0 : index
    %c0_32 = arith.constant 0 : index
    %69 = vector.load %arg9[%c0_29, %c0_30, %c0_31, %c0_32] : memref<1x8x16x128xbf16, #tpu.memory_space<vmem>>, vector<1x8x16x128xbf16>
    %70 = vector.shape_cast %69 : vector<1x8x16x128xbf16> to vector<8x16x128xbf16>
    %71 = vector.shape_cast %68 : vector<8x16x128xbf16> to vector<1x8x16x128xbf16>
    tpu.vector_store %arg9[%c0_29, %c0_30, %c0_31, %c0_32], %71 {strides = array<i32>} : memref<1x8x16x128xbf16, #tpu.memory_space<vmem>>, vector<1x8x16x128xbf16>,
    return
  }
  func.func @transform_0(%arg0: i32, %arg1: i32) -> (i32, i32, i32, i32) {
    %c0_i32 = arith.constant 0 : i32
    %c0_i32_0 = arith.constant 0 : i32
    %c0_i32_1 = arith.constant 0 : i32
    %c0_i32_2 = arith.constant 0 : i32
    return %arg0, %c0_i32, %c0_i32_0, %c0_i32_1 : i32, i32, i32, i32
  }
  func.func @transform_1(%arg0: i32, %arg1: i32) -> (i32, i32) {
    %c0_i32 = arith.constant 0 : i32
    %c0_i32_0 = arith.constant 0 : i32
    %c0_i32_1 = arith.constant 0 : i32
    return %c0_i32, %c0_i32_0 : i32, i32
  }
  func.func @transform_2(%arg0: i32, %arg1: i32) -> (i32, i32) {
    %c0_i32 = arith.constant 0 : i32
    %c0_i32_0 = arith.constant 0 : i32
    %c0_i32_1 = arith.constant 0 : i32
    return %c0_i32, %c0_i32_0 : i32, i32
  }
  func.func @transform_3(%arg0: i32, %arg1: i32) -> (i32, i32, i32) {
    %c0_i32 = arith.constant 0 : i32
    %c0_i32_0 = arith.constant 0 : i32
    %c0_i32_1 = arith.constant 0 : i32
    %c0_i32_2 = arith.constant 0 : i32
    return %c0_i32, %c0_i32_0, %c0_i32_1 : i32, i32, i32
  }
  func.func @transform_4(%arg0: i32, %arg1: i32) -> (i32, i32) {
    %c0_i32 = arith.constant 0 : i32
    %c0_i32_0 = arith.constant 0 : i32
    %c0_i32_1 = arith.constant 0 : i32
    return %c0_i32, %c0_i32_0 : i32, i32
  }
  func.func @transform_5(%arg0: i32, %arg1: i32) -> (i32, i32) {
    %c0_i32 = arith.constant 0 : i32
    %c0_i32_0 = arith.constant 0 : i32
    %c0_i32_1 = arith.constant 0 : i32
    return %c0_i32, %c0_i32_0 : i32, i32
  }
  func.func @transform_6(%arg0: i32, %arg1: i32) -> (i32, i32) {
    %c0_i32 = arith.constant 0 : i32
    %c0_i32_0 = arith.constant 0 : i32
    %c0_i32_1 = arith.constant 0 : i32
    return %c0_i32, %c0_i32_0 : i32, i32
  }
  func.func @transform_7(%arg0: i32, %arg1: i32) -> (i32, i32, i32, i32) {
    %c0_i32 = arith.constant 0 : i32
    %c0_i32_0 = arith.constant 0 : i32
    %c0_i32_1 = arith.constant 0 : i32
    return %arg0, %arg1, %c0_i32, %c0_i32_0 : i32, i32, i32, i32
  }
}

</mosaic_0001>

<bundles_post_ra>
// kernel: tpu_custom_call.1
= control target key start
LH: loop header
LB: loop body
LE: loop exit
PB: predicated region body
PF: predicated region fallthrough
CT: control target
= control target key end

     0   :  { %s4099_s0 = inlined_call_operand.hbm [shape: bf16[2,18,16,128], index: 0, kind: input, shape index: {}]   ;;  %s4100_s1 = inlined_call_operand.hbm [shape: bf16[128,128], index: 1, kind: input, shape index: {}]   ;;  %s4101_s2 = inlined_call_operand.vmem [shape: f32[1,128], index: 2, kind: input, shape index: {}]   ;;  %s4102_s3 = inlined_call_operand.hbm [shape: bf16[3,128,128], index: 3, kind: input, shape index: {}]   ;;  %s4103_s4 = inlined_call_operand.vmem [shape: f32[1,128], index: 4, kind: input, shape index: {}]   ;;  %s4104_s5 = inlined_call_operand.hbm [shape: bf16[256,128], index: 5, kind: input, shape index: {}]   ;;  %s4105_s6 = inlined_call_operand.vmem [shape: f32[1,128], index: 6, kind: input, shape index: {}]   ;;  %s4106_s7 = inlined_call_operand.hbm [shape: bf16[2,16,16,128], index: 7, kind: output, shape index: {}]  }
   0x1   :  { %4121 = sst [smem:[#allocation20_spill]] %s4100_s1 }
   0x2   :  { %4122 = sst [smem:[#allocation21_spill]] %s4102_s3 }
   0x3   :  { %4123 = sst [smem:[#allocation22_spill]] %s4103_s4 }
   0x4   :  { %4124 = sst [smem:[#allocation23_spill]] %s4105_s6 }
   0x5   :  { %4125 = sst [smem:[#allocation24_spill]] %s4106_s7 }
   0x6   :  { %12 = vsyncpa [#allocation3], 0 }
   0x7   :  { %14 = vsyncpa [#allocation3 + $0x1], 0 }
   0x8   :  { %15 = vsyncpa [#allocation6], 0 }
   0x9   :  { %16 = vsyncpa [#allocation9], 0 }
   0xa   :  { %17 = vsyncpa [#allocation4], 0 }
   0xb   :  { %19 = vsyncpa [#allocation4 + $0x1], 0  ;;  %s3207_s24 = smov 0   ;;  %s3209_s25 = smov 0  }
   0xc   :  { %s3211_s26 = smov 0   ;;  %s3213_s27 = smov 0  }
   0xd   :  { %s3215_s28 = smov 0   ;;  %s3217_s29 = smov 0  }
   0xe   :  { %s3219_s30 = smov 0   ;;  %s3221_s8 = smov 0  }
   0xf   :  { %s3223_s9 = smov 0   ;;  %s3225_s10 = smov 0  }
  0x10   :  { %s3227_s11 = smov 0  }
  0x11 LB: > { %4126 = sst [smem:[#allocation15_spill]] %s3114_s24  ;;  %s2071_s12 = sadd.s32 4294967295, %s3154_s11   ;;  %s3154_s11 = sphi %s3227_s11, %s25_s11   ;;  %s3150_s10 = sphi %s3225_s10, %s4189_s10   ;;  %s3146_s9 = sphi %s3223_s9, %s4188_s9   ;;  %s3142_s8 = sphi %s3221_s8, %s4187_s8   ;;  %s3138_s30 = sphi %s3219_s30, %s4186_s30   ;;  %s3134_s29 = sphi %s3217_s29, %s4185_s29   ;;  %s3130_s28 = sphi %s3215_s28, %s4184_s28   ;;  %s3126_s27 = sphi %s3213_s27, %s4183_s27   ;;  %s3122_s26 = sphi %s3211_s26, %s4182_s26   ;;  %s3118_s25 = sphi %s3209_s25, %s4181_s25   ;;  %s3114_s24 = sphi %s3207_s24, %s4180_s24  }
  0x12   : > { %4127 = sst [smem:[#allocation16_spill]] %s3118_s25  ;;  %s2072_s13 = sadd.s32 4294967294, %s3154_s11  }
  0x13   : > { %4128 = sst [smem:[#allocation17_spill]] %s3142_s8  ;;  %p57_p0 = scmp.ne.s32.totalorder %s3130_s28, %s3126_s27 }
  0x14   : > { %p3263_p1 = scmp.eq.s32.totalorder %s2071_s12, 0  ;;  %p208_p2 = scmp.ne.s32.totalorder %s3122_s26, %s3118_s25 }
  0x15   : > { %p209_p4 = scmp.eq.s32.totalorder %s2071_s12, 3  ;;  %p214_p5 = scmp.ne.s32.totalorder %s3118_s25, %s3114_s24 }
  0x16   : > { %s4129_s14 = scalar_select %p3263_p1, 1, 0 }
  0x17   : > { %p3272_p3 = por %p3263_p1, %p57_p0  ;;  %p215_p6 = scmp.eq.s32.totalorder %s2072_s13, 3 }
  0x18   : > { %p3278_p7 = por %p209_p4, %p208_p2  ;;  %p2073_p8 = scmp.ge.s32.totalorder %s3154_s11, 1 }
  0x19   : > { %s4130_s16 = scalar_select %p3272_p3, 1, 0 }
  0x1a   : > { %s4131_s17 = scalar_select %p3278_p7, 1, 0 }
  0x1b   : > { %p3283_p9 = por %p215_p6, %p214_p5  ;;  %p222_p10 = scmp.lt.s32.totalorder %s3154_s11, 5 }
  0x1c   : > { %4132 = sst [smem:[#allocation18_spill]] %s4131_s17  ;;  %s3156_s20 = smov [#allocation5]  }
  0x1d   : > { %s4133_s18 = scalar_select %p3283_p9, 1, 0 }
  0x1e   : > { %p3288_p11 = pnand %p2073_p8, %p222_p10  ;;  %s234_s21 = sshll.u32 %s3156_s20, 4  ;;  %s3292_s21 = int_to_ptr.vmem [resolvable:$true] %s234_s21 }
  0x1f   : > { %4134 = sst [smem:[#allocation19_spill]] %s4133_s18  ;;  %s3157_s23 = smov [#allocation7]  }
  0x20   : > { %s4135_s19 = scalar_select %p3288_p11, 1, 0 }
  0x21   : > { %p2622_p12 = pneg %p3288_p11  ;;  %s250_s27 = sshll.u32 %s3157_s23, 4  ;;  %s3302_s27 = int_to_ptr.vmem [resolvable:$true] %s250_s27 }
  0x22   : > { %s3158_s12 = smov [#allocation8]   ;;  %s4137_s1 = sld [smem:[#allocation20_spill]] }
  0x23   : > { %p3298_p13 = pnand %p2622_p12, %p3263_p1  ;;  %s3304_s13 = sshll.u32 %s3158_s12, 4  ;;  %s267_s13 = int_to_ptr.vmem [resolvable:$true] %s3304_s13 }
  0x25   : > { %p3314_p2 = pneg %p3298_p13 }
  0x28   : > { %s2910_s20 = scalar_lea.hbm %s4137_s1, 1024 }
  0x29   : > { %p2911_p0 = scmp.ne.s32.totalorder %s4137_s1, %s2910_s20  ;;  %p2917_p6 = scmp.lt.u32.totalorder %s2910_s20, %s4137_s1 }
  0x2b   : > { %p2913_p4 = pnand %p3314_p2, %p2911_p0 }
  0x2d   : > { %p2914_p5 = pneg %p2913_p4 }
  0x2f   : > { %p2919_p8 = pnand %p2917_p6, %p2914_p5 }
  0x31   : > { %2922 = shalt.err (!%p2919_p8)
}
  0x32   : > { %s2923_s7 = scalar_lea.vmem %s3292_s21, 1024  ;;  %p2931_p7 = scmp.lt.s32.totalorder %s3292_s21, %s3292_s21 }
  0x33   : > { %p2924_p10 = scmp.ne.s32.totalorder %s3292_s21, %s2923_s7  ;;  %p2932_p1 = scmp.lt.s32.totalorder %s2923_s7, %s2923_s7 }
  0x35   : > { %p2926_p12 = pnand %p2924_p10, %p3314_p2  ;;  %p2933_p0 = por %p2932_p1, %p2931_p7 }
  0x37   : > { %p2927_p9 = pneg %p2926_p12 }
  0x39   : > { %p2934_p4 = pnand %p2933_p0, %p2927_p9 }
  0x3b   : > { %2937 = shalt.err (!%p2934_p4)
}
  0x3c   : > { %s4119_s24 = smov 64   ;;  %s4120_s15 = smov 4  }
  0x3d   : > { %2625 = dma.hbm_to_vmem [thread:$0]  (!%p3298_p13), %s4137_s1, 1024, %s3292_s21, [#allocation6], %s4119_s24, %s4119_s24, %s4120_s15  }
  0x3e   : > { %s4139_s3 = sld [smem:[#allocation21_spill]] }
  0x44   : > { %s2938_s7 = scalar_lea.hbm %s4139_s3, 3072 }
  0x45   : > { %p2939_p1 = scmp.ne.s32.totalorder %s4139_s3, %s2938_s7  ;;  %p2945_p5 = scmp.lt.u32.totalorder %s2938_s7, %s4139_s3 }
  0x47   : > { %p2941_p7 = pnand %p2939_p1, %p3314_p2 }
  0x49   : > { %p2942_p9 = pneg %p2941_p7 }
  0x4b   : > { %p2947_p6 = pnand %p2945_p5, %p2942_p9 }
  0x4d   : > { %2950 = shalt.err (!%p2947_p6)
}
  0x4e   : > { %s2951_s21 = scalar_lea.vmem %s3302_s27, 3072  ;;  %p2959_p0 = scmp.lt.s32.totalorder %s3302_s27, %s3302_s27 }
  0x4f   : > { %p2952_p8 = scmp.ne.s32.totalorder %s3302_s27, %s2951_s21  ;;  %p2960_p4 = scmp.lt.s32.totalorder %s2951_s21, %s2951_s21 }
  0x51   : > { %p2954_p10 = pnand %p2952_p8, %p3314_p2  ;;  %p2961_p1 = por %p2960_p4, %p2959_p0 }
  0x53   : > { %p2955_p12 = pneg %p2954_p10 }
  0x55   : > { %p2962_p7 = pnand %p2961_p1, %p2955_p12 }
  0x57   : > { %2965 = shalt.err (!%p2962_p7)
}
  0x58   : > { %2628 = dma.hbm_to_vmem [thread:$0]  (!%p3298_p13), %s4139_s3, 3072, %s3302_s27, [#allocation6], %s4119_s24, %s4119_s24, %s4120_s15  }
  0x59   : > { %s2966_s18 = scalar_lea.hbm %s4104_s5, 2048 }
  0x5a   : > { %p2967_p9 = scmp.ne.s32.totalorder %s4104_s5, %s2966_s18  ;;  %p2973_p8 = scmp.lt.u32.totalorder %s2966_s18, %s4104_s5 }
  0x5c   : > { %p2969_p5 = pnand %p2967_p9, %p3314_p2 }
  0x5e   : > { %p2970_p6 = pneg %p2969_p5 }
  0x60   : > { %p2975_p10 = pnand %p2973_p8, %p2970_p6 }
  0x62   : > { %2978 = shalt.err (!%p2975_p10)
}
  0x63   : > { %s2979_s21 = scalar_lea.vmem %s267_s13, 2048  ;;  %p2987_p1 = scmp.lt.s32.totalorder %s267_s13, %s267_s13 }
  0x64   : > { %p2980_p12 = scmp.ne.s32.totalorder %s267_s13, %s2979_s21  ;;  %p2988_p7 = scmp.lt.s32.totalorder %s2979_s21, %s2979_s21 }
  0x66   : > { %p2982_p0 = pnand %p2980_p12, %p3314_p2  ;;  %p2989_p3 = por %p2988_p7, %p2987_p1 }
  0x68   : > { %p2983_p4 = pneg %p2982_p0 }
  0x6a   : > { %p2990_p11 = pnand %p2989_p3, %p2983_p4 }
  0x6c   : > { %2993 = shalt.err (!%p2990_p11)
}
  0x6d   : > { %2631 = dma.hbm_to_vmem [thread:$0]  (!%p3298_p13), %s4104_s5, 2048, %s267_s13, [#allocation9], %s4119_s24, %s4119_s24, %s4120_s15  }
  0x6e   : > { %s34_s17 = sadd.s32 1, %s3146_s9  ;;  %s37_s22 = sadd.s32 1, %s3150_s10 }
  0x6f   : > { %p35_p3 = scmp.ge.s32.totalorder %s34_s17, 2  ;;  %s44_s6 = sadd.s32 1, %s3134_s29 }
  0x70   : > { %p51_p11 = scmp.ne.s32.totalorder %s3134_s29, %s3130_s28  ;;  %p52_p2 = scmp.eq.s32.totalorder %s3154_s11, 0 }
  0x71   : > { %s4191_s17 = smov (%p35_p3, %s34_s17), 0  ;;  %s4193_s22 = smov (!%p35_p3, %s37_s22), %s3150_s10 }
  0x72   : > { %s194_s25 = ssub.s32 %s3146_s9, %s4191_s17  ;;  %p39_p9 = scmp.ge.s32.totalorder %s4193_s22, 2 }
  0x73   : > { %p2643_p5 = scmp.lt.s32.totalorder %s3154_s11, 4  ;;  %p3398_p13 = por %p52_p2, %p51_p11 }
  0x74   : > { %s283_s8 = sand.u32 1, %s3134_s29   ;;  %s4195_s22 = smov (%p39_p9, %s4193_s22), 0 }
  0x75   : > { %s2603_s18 = smul.u32 144, %s283_s8  ;;  %s41_s20 = ssub.s32 %s3150_s10, %s4195_s22 }
  0x76   : > { %s2604_s23 = smul.u32 2304, %s3150_s10  ;;  %p42_p6 = scmp.eq.s32.totalorder %s41_s20, 0 }
  0x77   : > { %s195_s12 = sor.u32 %s194_s25, %s41_s20  ;;  %s4141_s21 = sadd.s32 1, %s3122_s26 }
  0x78   : > { %p196_p8 = scmp.eq.s32.totalorder %s195_s12, 0  ;;  %s3419_s15 = scalar_lea.hbm %s4099_s0, %s2604_s23 }
  0x79   : > { %s3409_s7 = scalar_select %p42_p6, %s3134_s29, %s44_s6  }
  0x7a   : > { %s3414_s27 = scalar_select %p196_p8, %s3122_s26, %s4141_s21  }
  0x7b   : > { %s287_s1 = scalar_lea.vmem [#allocation2], %s2603_s18  ;;  %p3427_p10 = pnand %p2643_p5, %p3398_p13 }
  0x7c   : > { %s294_s3 = sshll.u32 %s287_s1, 4  ;;  %s3431_s25 = scalar_lea.sflag [#allocation3], %s283_s8  ;;  %s3421_s3 = int_to_ptr.vmem [resolvable:$true] %s294_s3 }
  0x7d   : > { %s2994_s24 = scalar_lea.hbm %s3419_s15, 2304  ;;  %p2996_p0 = pneg %p3427_p10 }
  0x7e   : > { %p2995_p12 = scmp.ne.s32.totalorder %s3419_s15, %s2994_s24  ;;  %s2999_s13 = scalar_lea.hbm %s4099_s0, 4608 }
  0x7f   : > { %p3000_p7 = scmp.lt.u32.totalorder %s3419_s15, %s4099_s0  ;;  %p3001_p3 = scmp.lt.u32.totalorder %s2999_s13, %s2994_s24 }
  0x80   : > { %p2997_p4 = pnand %p2996_p0, %p2995_p12  ;;  %p3003_p2 = scmp.lt.u32.totalorder %s2994_s24, %s3419_s15 }
  0x81   : > { %p3002_p11 = por %p3001_p3, %p3000_p7 }
  0x82   : > { %p2998_p1 = pneg %p2997_p4 }
  0x83   : > { %p3004_p9 = por %p3003_p2, %p3002_p11 }
  0x85   : > { %p3005_p5 = pnand %p3004_p9, %p2998_p1 }
  0x87   : > { %3008 = shalt.err (!%p3005_p5)
}
  0x88   : > { %s3009_s8 = scalar_lea.vmem %s3421_s3, 2304  ;;  %s3161_s12 = smov [#allocation2]  }
  0x89   : > { %p3010_p13 = scmp.ne.s32.totalorder %s3421_s3, %s3009_s8  ;;  %s3014_s21 = sshll.u32 %s3161_s12, 4  ;;  %s3015_s21 = int_to_ptr.vmem [resolvable:$false] %s3014_s21 }
  0x8a   : > { %s3016_s4 = scalar_lea.vmem %s3015_s21, 4608  ;;  %p3017_p12 = scmp.lt.s32.totalorder %s3421_s3, %s3015_s21 }
  0x8b   : > { %p3012_p6 = pnand %p3010_p13, %p2996_p0  ;;  %p3018_p4 = scmp.lt.s32.totalorder %s3016_s4, %s3009_s8 }
  0x8d   : > { %p3013_p8 = pneg %p3012_p6  ;;  %p3019_p7 = por %p3018_p4, %p3017_p12 }
  0x8f   : > { %p3020_p3 = pnand %p3019_p7, %p3013_p8 }
  0x91   : > { %3023 = shalt.err (!%p3020_p3)
}
  0x92   : > { %s4143_s24 = smov 4   ;;  %s4144_s1 = smov 64  }
  0x93   : > { %2635 = dma.hbm_to_vmem [thread:$0]  (!%p3427_p10), %s3419_s15, 2304, %s3421_s3, %s3431_s25, %s4144_s1, %s4144_s1, %s4143_s24  }
  0x94   : > { %p4145_p0 = scmp.ne.s32.totalorder %s4135_s19, 0 }
  0x95   : > { %s308_s18 = sand.u32 (!%p4145_p0), 1, %s3130_s28   ;;  %p4146_p1 = scmp.ne.s32.totalorder (!%p4145_p0), %s4130_s16, 0 }
  0x96   : > { %306 = sbr.rel (%p4145_p0) target bundleno = 1130 (0x46a), region = 48  ;;  %s309_s20 = scalar_lea.sflag (!%p4145_p0), [#allocation3], %s308_s18 }
  0x97   : > { %s2605_s13 = smul.u32 (!%p4145_p0), 144, %s308_s18 }
  0x99   : > { %s312_s23 = scalar_lea.vmem (!%p4145_p0), [#allocation2], %s2605_s13 }
  0x9d   : > { %3097 = dma.done.wait (%p4146_p1), %s309_s20, 2304  }
  0x9e   : > { %3099 = vsyncadd (%p4146_p1), %s309_s20, 4294964992  ;;  %p4147_p11 = scmp.ne.s32.totalorder %s4129_s14, 0 }
  0xa0   : > { %3101 = dma.done.wait (%p4147_p11), [#allocation6], 4096  }
  0xa1   : > { %3103 = vsyncadd (%p4147_p11), [#allocation6], 4294963200 }
  0xa2   : > { %3105 = dma.done.wait (%p4147_p11), [#allocation9], 2048  }
  0xa3   : > { %3107 = vsyncadd (%p4147_p11), [#allocation9], 4294965248  ;;  %v2845_v0 = vld [vmem:[#allocation5] sm:$0xff]   ;;  %v2846_v1 = vld [vmem:[#allocation5 + $0x8] sm:$0xff]   ;;  %s2244_s3 = sshll.u32 %s3138_s30, 6  ;;  %s2084_s14 = sshll.u32 %s3138_s30, 3 }
  0xa4   : > { %2439 = vmatprep.subr.bf16.mxu0 %v2845_v0  ;;  %v2847_v2 = vld [vmem:[#allocation5 + $0x10] sm:$0xff]   ;;  %s3478_s16 = scalar_lea.vmem %s312_s23, %s2244_s3 [#allocation2]  ;;  %v2848_v3 = vld [vmem:[#allocation5 + $0x18] sm:$0xff]   ;;  %v2849_v5 = vld [vmem:[#allocation5 + $0x20] sm:$0xff]   ;;  %v3491_v22 = vstv %s2084_s14  ;;  %vm745_vm6 = vcmask 1040384   ;;  %vm806_vm7 = vcmask 1046528   ;;  %s3162_s6 = smov 8  }
  0xa5   : > { %2440 = vmatpush3.bf16.msra.mxu0 %v2845_v0  ;;  %v2853_v4 = vld [vmem:[%s3478_s16] sm:$0xff]   ;;  %v2850_v6 = vld [vmem:[#allocation5 + $0x28] sm:$0xff]   ;;  %v2851_v7 = vld [vmem:[#allocation5 + $0x30] sm:$0xff]   ;;  %v646_v23 = vadd.s32 1, %v3491_v22  ;;  %vm655_vm2 = vcmp.ge.s32.totalorder %v3491_v22, 1  ;;  %vm665_vm3 = vcmp.le.s32.totalorder %v3491_v22, 16 }
  0xa6   : > { %2441 = vmatprep.subr.bf16.mxu0 %v2846_v1  ;;  %2455 = vmatprep.mubr.bf16.mxu0 %v2853_v4  ;;  %v2852_v8 = vld [vmem:[#allocation5 + $0x38] sm:$0xff]   ;;  %v2854_v9 = vld [vmem:[%s3478_s16 + $0x8] sm:$0xff]   ;;  %v2855_v10 = vld [vmem:[%s3478_s16 + $0x10] sm:$0xff]   ;;  %v648_v27 = vadd.s32 3, %v3491_v22  ;;  %v647_v31 = vadd.s32 2, %v3491_v22  ;;  %v3515_v39 = vadd.s32 5, %v3491_v22 }
  0xa7   : > { %v2856_v11 = vld [vmem:[%s3478_s16 + $0x18] sm:$0xff]   ;;  %v2857_v12 = vld [vmem:[%s3478_s16 + $0x20] sm:$0xff]   ;;  %v2858_v13 = vld [vmem:[%s3478_s16 + $0x28] sm:$0xff]   ;;  %vm656_vm0 = vcmp.ge.s32.totalorder %v646_v23, 1  ;;  %vm666_vm1 = vcmp.le.s32.totalorder %v646_v23, 16  ;;  %v3519_v42 = vadd.s32 4, %v3491_v22 }
  0xa8   : > { %v2859_v14 = vld [vmem:[%s3478_s16 + $0x30] sm:$0xff]   ;;  %v2860_v15 = vld [vmem:[%s3478_s16 + $0x38] sm:$0xff]   ;;  %v2861_v16 = vld [vmem:[%s3478_s16 + $0x40] sm:$0xff]   ;;  %vm658_vm8 = vcmp.ge.s32.totalorder %v648_v27, 1  ;;  %vm668_vm9 = vcmp.le.s32.totalorder %v648_v27, 16  ;;  %vm657_vm10 = vcmp.ge.s32.totalorder %v647_v31, 1 }
  0xa9   : > { %2442 = vmatpush3.bf16.msra.mxu0 %v2846_v1  ;;  %v2862_v17 = vld [vmem:[%s3478_s16 + $0x48] sm:$0xff]   ;;  %v2863_v18 = vld [vmem:[#allocation7 + $0x40] sm:$0xff]   ;;  %v2865_v20 = vld [vmem:[#allocation7 + $0x50] sm:$0xff]   ;;  %vm667_vm11 = vcmp.le.s32.totalorder %v647_v31, 16  ;;  %v3530_v47 = vadd.s32 7, %v3491_v22  ;;  %vm660_vm12 = vcmp.ge.s32.totalorder %v3515_v39, 1 }
  0xaa   : > { %2443 = vmatprep.subr.bf16.mxu0 %v2847_v2  ;;  %v2864_v19 = vld [vmem:[#allocation7 + $0x48] sm:$0xff]   ;;  %2475 = vmatprep.subr.bf16.mxu1 %v2863_v18  ;;  %v2866_v21 = vld [vmem:[#allocation7 + $0x58] sm:$0xff]   ;;  %v2867_v24 = vld [vmem:[#allocation7 + $0x60] sm:$0xff]   ;;  %vm670_vm13 = vcmp.le.s32.totalorder %v3515_v39, 16  ;;  %v3539_v51 = vadd.s32 6, %v3491_v22  ;;  %vm659_vm14 = vcmp.ge.s32.totalorder %v3519_v42, 1 }
  0xab   : > { %2476 = vmatpush3.bf16.msra.mxu1 %v2863_v18  ;;  %v3497_v25 = vld [vmem:[%s4101_s2] ss:$0 sm:$0xff]  ;;  %v2868_v28 = vld [vmem:[#allocation7 + $0x68] sm:$0xff]   ;;  %vm3504_vm4 = vmand %vm656_vm0, %vm666_vm1  ;;  %s3163_s25 = smov 16   ;;  %vm669_vm1 = vcmp.le.s32.totalorder %v3519_v42, 16  ;;  %v3596_v23 = vadd.s32 9, %v3491_v22 }
  0xac   : > { %2477 = vmatprep.subr.bf16.mxu1 %v2864_v19  ;;  %vm3509_vm5 = vmand %vm655_vm2, %vm665_vm3  ;;  %v2869_v62 = vld [vmem:[#allocation7 + $0x70] sm:$0xff]   ;;  %vm662_vm2 = vcmp.ge.s32.totalorder %v3530_v47, 1  ;;  %vm672_vm3 = vcmp.le.s32.totalorder %v3530_v47, 16  ;;  %s4170_s21 = sld [smem:[#allocation22_spill]]  ;;  %s4171_s4 = sld [smem:[#allocation16_spill]] }
  0xad   : > { %2444 = vmatpush3.bf16.msra.mxu0 %v2847_v2  ;;  %vm3553_vm15 = vmand %vm658_vm8, %vm668_vm9  ;;  %vm671_vm9 = vcmp.le.s32.totalorder %v3539_v51, 16  ;;  %s4172_s18 = sld [smem:[#allocation23_spill]]  ;;  %s4173_s3 = sld [smem:[#allocation17_spill]] }
  0xae   : > { %2445 = vmatprep.subr.bf16.mxu0 %v2848_v3  ;;  %vm3565_vm0 = vmand %vm657_vm10, %vm667_vm11  ;;  %vm664_vm10 = vcmp.ge.s32.totalorder %v3596_v23, 1  ;;  %vm674_vm11 = vcmp.le.s32.totalorder %v3596_v23, 16  ;;  %s4174_s15 = sld [smem:[#allocation18_spill]]  ;;  %s4175_s12 = sld [smem:[#allocation24_spill]] }
  0xaf   : > { %2478 = vmatpush3.bf16.msra.mxu1 %v2864_v19  ;;  %v2870_v19 = vld [vmem:[#allocation7 + $0x78] sm:$0xff]   ;;  %vm3633_vm8 = vmand %vm659_vm14, %vm669_vm1 }
  0xb0   : > { %2479 = vmatprep.subr.bf16.mxu1 %v2865_v20 }
  0xb1   : > { %2446 = vmatpush3.bf16.msra.mxu0 %v2848_v3 }
  0xb2   : > { %2447 = vmatprep.subr.bf16.mxu0 %v2849_v5  ;;  %s352_s13 = sand.u32 1, %s4171_s4  }
  0xb3   : > { %2480 = vmatpush3.bf16.msra.mxu1 %v2865_v20  ;;  %s2083_s20 = sshll.u32 %s352_s13, 6  ;;  %s2239_s14 = sshll.u32 %s4173_s3, 5 }
  0xb4   : > { %2481 = vmatprep.subr.bf16.mxu1 %v2866_v21  ;;  %s4002_s23 = scalar_lea.vmem [#allocation10], %s2083_s20  ;;  %s4038_s24 = scalar_lea.sflag [#allocation4], %s352_s13 }
  0xb5   : > { %2448 = vmatpush3.bf16.msra.mxu0 %v2849_v5  ;;  %p4176_p2 = scmp.ne.s32.totalorder %s4174_s15, 0 }
  0xb6   : > { %2449 = vmatprep.subr.bf16.mxu0 %v2850_v6 }
  0xb7   : > { %2482 = vmatpush3.bf16.msra.mxu1 %v2866_v21 }
  0xb8   : > { %2483 = vmatprep.subr.bf16.mxu1 %v2867_v24 }
  0xb9   : > { %2450 = vmatpush3.bf16.msra.mxu0 %v2850_v6 }
  0xba   : > { %2451 = vmatprep.subr.bf16.mxu0 %v2851_v7 }
  0xbb   : > { %2484 = vmatpush3.bf16.msra.mxu1 %v2867_v24 }
  0xbc   : > { %2485 = vmatprep.subr.bf16.mxu1 %v2868_v28 }
  0xbd   : > { %2452 = vmatpush3.bf16.msra.mxu0 %v2851_v7 }
  0xbe   : > { %2453 = vmatprep.subr.bf16.mxu0 %v2852_v8 }
  0xbf   : > { %2486 = vmatpush3.bf16.msra.mxu1 %v2868_v28 }
  0xc0   : > { %2487 = vmatprep.subr.bf16.mxu1 %v2869_v62 }
  0xc1   : > { %2454 = vmatpush3.bf16.msra.mxu0 %v2852_v8 }
  0xc3   : > { %2488 = vmatpush3.bf16.msra.mxu1 %v2869_v62 }
  0xc4   : > { %2456 = vmatmul.mubr.bf16.vlgmr.msra.gmra.mrb[0].mxu0 %v2854_v9  ;;  %2489 = vmatprep.subr.bf16.mxu1 %v2870_v19 }
  0xc5   : > { %2459 = vmatprep.mubr.bf16.mxu0 %v2855_v10 }
  0xc7   : > { %2490 = vmatpush3.bf16.msra.mxu1 %v2870_v19 }
  0xcc   : > { %2460 = vmatmul.mubr.bf16.gmra.mrb[4].mxu0 %v2856_v11 }
  0xcd   : > { %2463 = vmatprep.mubr.bf16.mxu0 %v2857_v12 }
  0xd4   : > { %2464 = vmatmul.mubr.bf16.gmra.mrb[8].mxu0 %v2858_v13 }
  0xd5   : > { %2467 = vmatprep.mubr.bf16.mxu0 %v2859_v14 }
  0xdc   : > { %2468 = vmatmul.mubr.bf16.gmra.mrb[12].mxu0 %v2860_v15 }
  0xdd   : > { %2471 = vmatprep.mubr.bf16.mxu0 %v2861_v16 }
  0xe4   : > { %2472 = vmatmul.mubr.bf16.gmra.mrb[16].mxu0 %v2862_v17 }
  0xe5   : > { %1775 = vmatprep.mubr.bf16.mxu0 %v2854_v9 }
 0x197   : > { %v2457_v26 = vpop.f32.mrb[0].mxu0 }
 0x198   : > { %v555_v29 = vadd.f32 %v2457_v26, %v3497_v25  ;;  %v546_v30 = vpop.f32.mrb[1].mxu0 }
 0x199   : > { %v547_v33 = vadd.f32 %v3497_v25, %v546_v30  ;;  %v2458_v34 = vpop.f32.mrb[2].mxu0 }
 0x19a   : > { %v627_v35 = vmax.f32 %v555_v29, 0.0  ;;  %v558_v37 = vadd.f32 %v2458_v34, %v3497_v25  ;;  %v549_v38 = vpop.f32.mrb[3].mxu0 }
 0x19b   : > { %v625_v40 = vmax.f32 %v547_v33, 0.0  ;;  %v550_v41 = vadd.f32 %v3497_v25, %v549_v38 }
 0x19c   : > { %v3523_v43 = vsel %vm3504_vm4, %v627_v35, 0.0  ;;  %v628_v44 = vmax.f32 %v558_v37, 0.0 }
 0x19d   : > { %v3527_v45 = vsel %vm3509_vm5, %v625_v40, 0.0  ;;  %v626_v46 = vmax.f32 %v550_v41, 0.0  ;;  %v749_v48 = vrot.slane %v3523_v43, 7  ;;  %v810_v49 = vrot.slane %v3523_v43, 1 }
 0x19e   : > { %v708_v50 = vsel %vm3504_vm4, %v628_v44, 0.0  ;;  %v807_v57 = vrot.slane %v3527_v45, 1  ;;  %v746_v15 = vrot.slane %v3527_v45, 7  ;;  %vm661_vm4 = vcmp.ge.s32.totalorder %v3539_v51, 1 }
 0x19f   : > { %v750_v52 = vrot.slane %v708_v50, 7  ;;  %v3543_v53 = vsel %vm3509_vm5, %v626_v46, 0.0  ;;  %v2461_v54 = vpop.f32.mrb[4].mxu0  ;;  %v2745_v55 = vpack.i.bf16 %v708_v50, %v3523_v43  ;;  %v811_v56 = vrot.slane %v708_v50, 1  ;;  %vm3619_vm5 = vmand %vm660_vm12, %vm670_vm13 }
 0x1a0   : > { %v747_v58 = vrot.slane %v3543_v53, 7  ;;  %v808_v59 = vrot.slane %v3543_v53, 1  ;;  %v571_v60 = vadd.f32 %v2461_v54, %v3497_v25  ;;  %v562_v61 = vpop.f32.mrb[5].mxu0  ;;  %v2825_v4 = vpack.i.bf16 %v3543_v53, %v3527_v45  ;;  %vm3683_vm12 = vmand %vm662_vm2, %vm672_vm3  ;;  %v2892_v53 = vld [vmem:[#allocation8 + $0x10] sm:$0xff]   ;;  %v2879_v45 = vld [vmem:[#allocation7 + $0x80] sm:$0xff]  }
 0x1a1   : > { %v563_v0 = vadd.f32 %v3497_v25, %v562_v61  ;;  %2746 = vrot.lane.b32.xlu0 %v2745_v55, %s3162_s6  ;;  %v2462_v1 = vpop.f32.mrb[6].mxu0  ;;  %v812_v2 = vsel %vm806_vm7, %v810_v49, %v811_v56  ;;  %v848_v3 = vsel %vm806_vm7, %v811_v56, 0.0  ;;  %v3580_v14 = vsel %vm745_vm6, %v749_v48, %v750_v52  ;;  %v3627_v52 = vld [vmem:[#allocation7] sm:$0xff]   ;;  %vm3695_vm13 = vmand %vm661_vm4, %vm671_vm9 }
 0x1a2   : > { %v631_v5 = vmax.f32 %v571_v60, 0.0  ;;  %v574_v7 = vadd.f32 %v2462_v1, %v3497_v25  ;;  %v565_v8 = vpop.f32.mrb[7].mxu0  ;;  %v2750_v9 = vpack.i.bf16 %v848_v3, %v812_v2  ;;  %v3571_v10 = vsel %vm806_vm7, %v807_v57, %v808_v59  ;;  %2507 = vmatprep.subr.bf16.mxu1 %v3627_v52 }
 0x1a3   : > { %v629_v11 = vmax.f32 %v563_v0, 0.0  ;;  %v566_v12 = vadd.f32 %v3497_v25, %v565_v8  ;;  %v3575_v13 = vsel %vm806_vm7, %v808_v59, 0.0  ;;  %v3607_v28 = vsel %vm745_vm6, %v746_v15, %v747_v58 }
 0x1a4   : > { %v3585_v16 = vsel %vm3553_vm15, %v631_v5, 0.0  ;;  %v632_v17 = vmax.f32 %v574_v7, 0.0  ;;  %2751 = vrot.lane.b32.xlu1 %v2750_v9, %s3163_s25  ;;  %v2830_v18 = vpack.i.bf16 %v3575_v13, %v3571_v10  ;;  %v3660_v5 = vadd.s32 8, %v3491_v22  ;;  %v2896_v10 = vld [vmem:[#allocation8 + $0x20] sm:$0xff]   ;;  %v2897_v13 = vld [vmem:[#allocation8 + $0x68] sm:$0xff]  }
 0x1a5   : > { %v3592_v20 = vsel %vm3565_vm0, %v629_v11, 0.0  ;;  %v630_v21 = vmax.f32 %v566_v12, 0.0  ;;  %v755_v24 = vrot.slane %v3585_v16, 7  ;;  %v816_v26 = vrot.slane %v3585_v16, 1 }
 0x1a6   : > { %v712_v27 = vsel %vm3553_vm15, %v632_v17, 0.0  ;;  %v752_v29 = vrot.slane %v3592_v20, 7  ;;  %v813_v30 = vrot.slane %v3592_v20, 1  ;;  %vm663_vm14 = vcmp.ge.s32.totalorder %v3660_v5, 1 }
 0x1a7   : > { %v817_v31 = vrot.slane %v712_v27, 1  ;;  %v710_v32 = vsel %vm3565_vm0, %v630_v21, 0.0  ;;  %v2465_v33 = vpop.f32.mrb[8].mxu0  ;;  %v756_v34 = vrot.slane %v712_v27, 7  ;;  %v2760_v49 = vpack.i.bf16 %v712_v27, %v3585_v16  ;;  %vm3741_vm0 = vmand %vm664_vm10, %vm674_vm11 }
 0x1a8   : > { %v753_v35 = vrot.slane %v710_v32, 7  ;;  %v814_v36 = vrot.slane %v710_v32, 1  ;;  %v587_v37 = vadd.f32 %v2465_v33, %v3497_v25  ;;  %v578_v38 = vpop.f32.mrb[9].mxu0  ;;  %v2755_v46 = vpack.i.bf16 %v710_v32, %v3592_v20 }
 0x1a9   : > { %v579_v41 = vadd.f32 %v3497_v25, %v578_v38  ;;  %v2466_v44 = vpop.f32.mrb[10].mxu0  ;;  %v818_v50 = vsel %vm806_vm7, %v816_v26, %v817_v31  ;;  %v850_v62 = vsel %vm806_vm7, %v817_v31, 0.0  ;;  %v3671_v9 = vsel %vm745_vm6, %v755_v24, %v756_v34 }
 0x1aa   : > { %v635_v54 = vmax.f32 %v587_v37, 0.0  ;;  %v590_v55 = vadd.f32 %v2466_v44, %v3497_v25  ;;  %v581_v56 = vpop.f32.mrb[11].mxu0  ;;  %v815_v57 = vsel %vm806_vm7, %v813_v30, %v814_v36  ;;  %v849_v58 = vsel %vm806_vm7, %v814_v36, 0.0  ;;  %2756 = vrot.lane.b32.xlu0 %v2755_v46, %s3162_s6 }
 0x1ab   : > { %v633_v59 = vmax.f32 %v579_v41, 0.0  ;;  %v582_v60 = vadd.f32 %v3497_v25, %v581_v56  ;;  %v2770_v61 = vpack.i.bf16 %v849_v58, %v815_v57  ;;  %v2765_v0 = vpack.i.bf16 %v850_v62, %v818_v50 }
 0x1ac   : > { %v3646_v42 = vsel %vm3619_vm5, %v635_v54, 0.0  ;;  %v636_v63 = vmax.f32 %v590_v55, 0.0  ;;  %v3651_v1 = vsel %vm745_vm6, %v752_v29, %v753_v35  ;;  %vm673_vm15 = vcmp.le.s32.totalorder %v3660_v5, 16 }
 0x1ad   : > { %v3655_v2 = vsel %vm3633_vm8, %v633_v59, 0.0  ;;  %v634_v3 = vmax.f32 %v582_v60, 0.0  ;;  %2771 = vrot.lane.b32.xlu1 %v2770_v61, %s3163_s25  ;;  %v761_v6 = vrot.slane %v3646_v42, 7  ;;  %v822_v7 = vrot.slane %v3646_v42, 1  ;;  %vm3753_vm1 = vmand %vm663_vm14, %vm673_vm15 }
 0x1ae   : > { %v716_v8 = vsel %vm3619_vm5, %v636_v63, 0.0  ;;  %v758_v11 = vrot.slane %v3655_v2, 7  ;;  %v819_v22 = vrot.slane %v3655_v2, 1  ;;  %2761 = vrot.lane.b32.xlu0 %v2760_v49, %s3162_s6  ;;  %vm1008_vm2 = vcmask 130048  }
 0x1af   : > { %v823_v12 = vrot.slane %v716_v8, 1  ;;  %v714_v17 = vsel %vm3633_vm8, %v634_v3, 0.0  ;;  %v2469_v19 = vpop.f32.mrb[12].mxu0  ;;  %v762_v21 = vrot.slane %v716_v8, 7  ;;  %v2775_v36 = vpack.i.bf16 %v716_v8, %v3646_v42 }
 0x1b0   : > { %v759_v26 = vrot.slane %v714_v17, 7  ;;  %v820_v27 = vrot.slane %v714_v17, 1  ;;  %v603_v30 = vadd.f32 %v2469_v19, %v3497_v25  ;;  %v594_v31 = vpop.f32.mrb[13].mxu0  ;;  %v2780_v35 = vpack.i.bf16 %v714_v17, %v3655_v2 }
 0x1b1   : > { %v595_v33 = vadd.f32 %v3497_v25, %v594_v31  ;;  %v2470_v34 = vpop.f32.mrb[14].mxu0  ;;  %v824_v37 = vsel %vm806_vm7, %v822_v7, %v823_v12  ;;  %v852_v51 = vsel %vm806_vm7, %v823_v12, 0.0  ;;  %v3728_v63 = vsel %vm745_vm6, %v761_v6, %v762_v21 }
 0x1b2   : > { %v639_v38 = vmax.f32 %v603_v30, 0.0  ;;  %v606_v40 = vadd.f32 %v2470_v34, %v3497_v25  ;;  %v597_v41 = vpop.f32.mrb[15].mxu0  ;;  %v821_v44 = vsel %vm806_vm7, %v819_v22, %v820_v27  ;;  %v851_v46 = vsel %vm806_vm7, %v820_v27, 0.0  ;;  %2766 = vrot.lane.b32.xlu0 %v2765_v0, %s3163_s25  ;;  %2781 = vrot.lane.b32.xlu1 %v2780_v35, %s3162_s6 }
 0x1b3   : > { %v637_v49 = vmax.f32 %v595_v33, 0.0  ;;  %v598_v50 = vadd.f32 %v3497_v25, %v597_v41  ;;  %v2790_v54 = vpack.i.bf16 %v851_v46, %v821_v44  ;;  %v2785_v56 = vpack.i.bf16 %v852_v51, %v824_v37 }
 0x1b4   : > { %v3708_v39 = vsel %vm3683_vm12, %v639_v38, 0.0  ;;  %v640_v55 = vmax.f32 %v606_v40, 0.0  ;;  %v3713_v57 = vsel %vm745_vm6, %v758_v11, %v759_v26  ;;  %vm1029_vm3 = vcmask 195584  }
 0x1b5   : > { %v3717_v58 = vsel %vm3695_vm13, %v637_v49, 0.0  ;;  %v638_v59 = vmax.f32 %v598_v50, 0.0  ;;  %v767_v60 = vrot.slane %v3708_v39, 7  ;;  %v828_v61 = vrot.slane %v3708_v39, 1  ;;  %vm3825_vm4 = vmpackc.low %vm1029_vm3, %vm1029_vm3 }
 0x1b6   : > { %v720_v62 = vsel %vm3683_vm12, %v640_v55, 0.0  ;;  %v764_v0 = vrot.slane %v3717_v58, 7  ;;  %v825_v3 = vrot.slane %v3717_v58, 1  ;;  %2776 = vrot.lane.b32.xlu0 %v2775_v36, %s3162_s6  ;;  %2791 = vrot.lane.b32.xlu1 %v2790_v54, %s3163_s25 }
 0x1b7   : > { %v829_v7 = vrot.slane %v720_v62, 1  ;;  %v718_v8 = vsel %vm3695_vm13, %v638_v59, 0.0  ;;  %v2473_v22 = vpop.f32.mrb[16].mxu0  ;;  %v768_v12 = vrot.slane %v720_v62, 7  ;;  %v2795_v33 = vpack.i.bf16 %v720_v62, %v3708_v39 }
 0x1b8   : > { %v765_v17 = vrot.slane %v718_v8, 7  ;;  %v826_v19 = vrot.slane %v718_v8, 1  ;;  %v619_v26 = vadd.f32 %v2473_v22, %v3497_v25  ;;  %v610_v21 = vpop.f32.mrb[17].mxu0  ;;  %v2800_v32 = vpack.i.bf16 %v718_v8, %v3717_v58 }
 0x1b9   : > { %v611_v30 = vadd.f32 %v3497_v25, %v610_v21  ;;  %v2474_v31 = vpop.f32.mrb[18].mxu0  ;;  %v830_v34 = vsel %vm806_vm7, %v828_v61, %v829_v7  ;;  %v854_v5 = vsel %vm806_vm7, %v829_v7, 0.0  ;;  %v3781_v62 = vsel %vm745_vm6, %v767_v60, %v768_v12 }
 0x1ba   : > { %v643_v35 = vmax.f32 %v619_v26, 0.0  ;;  %v622_v36 = vadd.f32 %v2474_v31, %v3497_v25  ;;  %v613_v37 = vpop.f32.mrb[19].mxu0  ;;  %v827_v38 = vsel %vm806_vm7, %v825_v3, %v826_v19  ;;  %v853_v47 = vsel %vm806_vm7, %v826_v19, 0.0  ;;  %2786 = vrot.lane.b32.xlu0 %v2785_v56, %s3163_s25  ;;  %2801 = vrot.lane.b32.xlu1 %v2800_v32, %s3162_s6 }
 0x1bb   : > { %v641_v40 = vmax.f32 %v611_v30, 0.0  ;;  %v614_v41 = vadd.f32 %v3497_v25, %v613_v37  ;;  %v2810_v44 = vpack.i.bf16 %v853_v47, %v827_v38  ;;  %v2805_v50 = vpack.i.bf16 %v854_v5, %v830_v34  ;;  %v2888_v37 = vld [vmem:[#allocation8] sm:$0xff]   ;;  %v2889_v38 = vld [vmem:[#allocation8 + $0x48] sm:$0xff]  }
 0x1bc   : > { %v723_v46 = vsel %vm3741_vm0, %v643_v35, 0.0  ;;  %v644_v49 = vmax.f32 %v622_v36, 0.0  ;;  %v3769_v54 = vsel %vm745_vm6, %v764_v0, %v765_v17  ;;  %v2887_v36 = vld [vmem:[#allocation8 + $0x40] sm:$0xff]   ;;  %v2890_v47 = vld [vmem:[#allocation8 + $0x8] sm:$0xff]  }
 0x1bd   : > { %v773_v51 = vrot.slane %v723_v46, 7  ;;  %v3773_v25 = vsel %vm3753_vm1, %v641_v40, 0.0  ;;  %v642_v55 = vmax.f32 %v614_v41, 0.0  ;;  %v834_v56 = vrot.slane %v723_v46, 1  ;;  %2375 = vmatprep.subr.bf16.mxu0 %v2887_v36  ;;  %v2891_v40 = vld [vmem:[#allocation8 + $0x50] sm:$0xff]   ;;  %v2894_v41 = vld [vmem:[#allocation8 + $0x18] sm:$0xff]  }
 0x1be   : > { %v770_v59 = vrot.slane %v3773_v25, 7  ;;  %v724_v61 = vsel %vm3741_vm0, %v644_v49, 0.0  ;;  %2796 = vrot.lane.b32.xlu0 %v2795_v33, %s3162_s6  ;;  %2811 = vrot.lane.b32.xlu1 %v2810_v44, %s3163_s25  ;;  %v831_v17 = vrot.slane %v3773_v25, 1  ;;  %v2895_v44 = vld [vmem:[#allocation8 + $0x60] sm:$0xff]  }
 0x1bf   : > { %v774_v3 = vrot.slane %v724_v61, 7  ;;  %v835_v7 = vrot.slane %v724_v61, 1  ;;  %v722_v8 = vsel %vm3753_vm1, %v642_v55, 0.0  ;;  %v2835_v22 = vpack.i.bf16 %v724_v61, %v723_v46  ;;  %2376 = vmatpush3.bf16.msra.mxu0 %v2888_v37  ;;  %v2899_v46 = vld [vmem:[#allocation8 + $0x70] sm:$0xff]  }
 0x1c0   : > { %v771_v19 = vrot.slane %v722_v8, 7  ;;  %v832_v26 = vrot.slane %v722_v8, 1  ;;  %v2815_v21 = vpack.i.bf16 %v722_v8, %v3773_v25  ;;  %v3795_v31 = vsel %vm745_vm6, 0.0, %v773_v51  ;;  %2377 = vmatprep.subr.bf16.mxu0 %v2889_v38 }
 0x1c1   : > { %v836_v27 = vsel %vm806_vm7, %v834_v56, %v835_v7  ;;  %v856_v12 = vsel %vm806_vm7, %v835_v7, 0.0  ;;  %v3792_v30 = vsel %vm745_vm6, %v773_v51, %v774_v3  ;;  %v797_v61 = vsel %vm745_vm6, 0.0, %v749_v48 }
 0x1c2   : > { %v833_v32 = vsel %vm806_vm7, %v831_v17, %v832_v26  ;;  %v855_v33 = vsel %vm806_vm7, %v832_v26, 0.0  ;;  %v2840_v34 = vpack.i.bf16 %v856_v12, %v836_v27  ;;  %v3802_v35 = vsel %vm745_vm6, %v770_v59, %v771_v19  ;;  %2806 = vrot.lane.b32.xlu0 %v2805_v50, %s3163_s25  ;;  %2816 = vrot.lane.b32.xlu1 %v2815_v21, %s3162_s6 }
 0x1c3   : > { %v2820_v23 = vpack.i.bf16 %v855_v33, %v833_v32  ;;  %2378 = vmatpush3.bf16.msra.mxu0 %v2890_v47  ;;  %vm987_vm7 = vcmask 64512  }
 0x1c4   : > { %2379 = vmatprep.subr.bf16.mxu0 %v2891_v40  ;;  %v2872_v40 = vld [vmem:[#allocation7 + $0x8] sm:$0xff]  }
 0x1c6   : > { %2821 = vrot.lane.b32.xlu1 %v2820_v23, %s3163_s25  ;;  %2826 = vrot.lane.b32.xlu0 %v2825_v4, %s3162_s6  ;;  %v2893_v4 = vld [vmem:[#allocation8 + $0x58] sm:$0xff]  }
 0x1c7   : > { %2380 = vmatpush3.bf16.msra.mxu0 %v2892_v53 }
 0x1c8   : > { %2381 = vmatprep.subr.bf16.mxu0 %v2893_v4 }
 0x1ca   : > { %2836 = vrot.lane.b32.xlu0 %v2835_v22, %s3162_s6  ;;  %2831 = vrot.lane.b32.xlu1 %v2830_v18, %s3163_s25  ;;  %v2898_v18 = vld [vmem:[#allocation8 + $0x28] sm:$0xff]  }
 0x1cb   : > { %2382 = vmatpush3.bf16.msra.mxu0 %v2894_v41 }
 0x1cc   : > { %2383 = vmatprep.subr.bf16.mxu0 %v2895_v44 }
 0x1ce   : > { %2841 = vrot.lane.b32.xlu1 %v2840_v34, %s3163_s25  ;;  %s1953_s25 = sshll.u32 %s4002_s23, 4  ;;  %s4033_s25 = int_to_ptr.vmem [resolvable:$true] %s1953_s25 }
 0x1cf   : > { %2384 = vmatpush3.bf16.msra.mxu0 %v2896_v10  ;;  %s3024_s1 = scalar_lea.vmem %s4033_s25, 1024 }
 0x1d0   : > { %2385 = vmatprep.subr.bf16.mxu0 %v2897_v13  ;;  %p3025_p10 = scmp.ne.s32.totalorder %s4033_s25, %s3024_s1 }
 0x1d2   : > { %p3026_p9 = pnand %p3025_p10, %p4176_p2 }
 0x1d3   : > { %2386 = vmatpush3.bf16.msra.mxu0 %v2898_v18  ;;  %v2873_v18 = vld [vmem:[#allocation7 + $0x10] sm:$0xff]  }
 0x1d4   : > { %2387 = vmatprep.subr.bf16.mxu0 %v2899_v46  ;;  %p3027_p5 = pneg %p3026_p9 }
 0x213   : > { %v2747_v5 = vpop.permute.xlu0 %2746 }
 0x214   : > { %v2749_v49 = vunpack.i.h.bf16 %v2747_v5  ;;  %v2748_v50 = vunpack.i.l.bf16 %v2747_v5 }
 0x216   : > { %v2752_v51 = vpop.permute.xlu1 %2751  ;;  %v990_v3 = vsel %vm987_vm7, %v797_v61, %v2748_v50  ;;  %v991_v7 = vsel %vm987_vm7, %v3580_v14, %v2749_v49  ;;  %v798_v14 = vsel %vm745_vm6, 0.0, %v752_v29  ;;  %v799_v29 = vsel %vm745_vm6, 0.0, %v755_v24 }
 0x217   : > { %v2754_v55 = vunpack.i.h.bf16 %v2752_v51  ;;  %v2753_v56 = vunpack.i.l.bf16 %v2752_v51 }
 0x219   : > { %v1011_v8 = vsel %vm1008_vm2, %v990_v3, %v2753_v56  ;;  %v1012_v22 = vsel %vm1008_vm2, %v991_v7, %v2754_v55  ;;  %v2874_v3 = vld [vmem:[#allocation7 + $0x18] sm:$0xff]  }
 0x21a   : > { %v3829_v19 = vpack.c.bf16 %v1012_v22, %v1011_v8 }
 0x21c   : > { %2491 = vmatprep.mubr.msk.bf16.mxu1 %vm3825_vm4, %v3829_v19  ;;  %v2757_v43 = vpop.permute.xlu0 %2756 }
 0x21d   : > { %v2759_v48 = vunpack.i.h.bf16 %v2757_v43  ;;  %v2758_v26 = vunpack.i.l.bf16 %v2757_v43 }
 0x21f   : > { %v2772_v21 = vpop.permute.xlu1 %2771  ;;  %v992_v32 = vsel %vm987_vm7, %v798_v14, %v2758_v26  ;;  %v993_v33 = vsel %vm987_vm7, %v3651_v1, %v2759_v48 }
 0x220   : > { %v2774_v27 = vunpack.i.h.bf16 %v2772_v21  ;;  %v2773_v12 = vunpack.i.l.bf16 %v2772_v21  ;;  %v2762_v34 = vpop.permute.xlu0 %2761 }
 0x221   : > { %v2764_v38 = vunpack.i.h.bf16 %v2762_v34  ;;  %v2763_v47 = vunpack.i.l.bf16 %v2762_v34 }
 0x222   : > { %v1013_v23 = vsel %vm1008_vm2, %v992_v32, %v2773_v12  ;;  %v1014_v36 = vsel %vm1008_vm2, %v993_v33, %v2774_v27  ;;  %v2875_v12 = vld [vmem:[#allocation7 + $0x20] sm:$0xff]  }
 0x223   : > { %v3842_v37 = vpack.c.bf16 %v1014_v36, %v1013_v23  ;;  %v995_v41 = vsel %vm987_vm7, %v3671_v9, %v2764_v38  ;;  %v994_v44 = vsel %vm987_vm7, %v799_v29, %v2763_v47 }
 0x224   : > { %v2767_v20 = vpop.permute.xlu0 %2766  ;;  %v2782_v53 = vpop.permute.xlu1 %2781 }
 0x225   : > { %2492 = vmatmul.mubr.msk.bf16.vlgmr.msra.gmra.mrb[0].mxu1 %vm3825_vm4, %v3842_v37  ;;  %v2769_v1 = vunpack.i.h.bf16 %v2767_v20  ;;  %v2768_v4 = vunpack.i.l.bf16 %v2767_v20  ;;  %v2784_v10 = vunpack.i.h.bf16 %v2782_v53  ;;  %v2783_v13 = vunpack.i.l.bf16 %v2782_v53  ;;  %v2876_v53 = vld [vmem:[#allocation7 + $0x28] sm:$0xff]  }
 0x226   : > { %2508 = vmatpush3.bf16.msra.mxu1 %v3627_v52  ;;  %v800_v52 = vsel %vm745_vm6, 0.0, %v758_v11 }
 0x227   : > { %2509 = vmatprep.subr.bf16.mxu1 %v2872_v40  ;;  %v1015_v5 = vsel %vm1008_vm2, %v994_v44, %v2768_v4  ;;  %v1016_v46 = vsel %vm1008_vm2, %v995_v41, %v2769_v1  ;;  %v997_v51 = vsel %vm987_vm7, %v3713_v57, %v2784_v10  ;;  %v996_v55 = vsel %vm987_vm7, %v800_v52, %v2783_v13 }
 0x228   : > { %v3856_v16 = vpack.c.bf16 %v1016_v46, %v1015_v5  ;;  %v2777_v24 = vpop.permute.xlu0 %2776  ;;  %v2792_v49 = vpop.permute.xlu1 %2791  ;;  %v801_v57 = vsel %vm745_vm6, 0.0, %v761_v6  ;;  %v2877_v46 = vld [vmem:[#allocation7 + $0x30] sm:$0xff]  }
 0x229   : > { %v2794_v50 = vunpack.i.h.bf16 %v2792_v49  ;;  %v2793_v9 = vunpack.i.l.bf16 %v2792_v49  ;;  %v2779_v56 = vunpack.i.h.bf16 %v2777_v24  ;;  %v2778_v61 = vunpack.i.l.bf16 %v2777_v24 }
 0x22a   : > { %2510 = vmatpush3.bf16.msra.mxu1 %v2872_v40  ;;  %2495 = vmatprep.mubr.msk.bf16.mxu1 %vm3825_vm4, %v3856_v16 }
 0x22b   : > { %2511 = vmatprep.subr.bf16.mxu1 %v2873_v18  ;;  %v1017_v2 = vsel %vm1008_vm2, %v996_v55, %v2793_v9  ;;  %v1018_v11 = vsel %vm1008_vm2, %v997_v51, %v2794_v50  ;;  %v999_v26 = vsel %vm987_vm7, %v3728_v63, %v2779_v56  ;;  %v998_v21 = vsel %vm987_vm7, %v801_v57, %v2778_v61 }
 0x22c   : > { %v3869_v7 = vpack.c.bf16 %v1018_v11, %v1017_v2  ;;  %v2787_v8 = vpop.permute.xlu0 %2786  ;;  %v2802_v22 = vpop.permute.xlu1 %2801  ;;  %v802_v63 = vsel %vm745_vm6, 0.0, %v764_v0  ;;  %v796_v2 = vsel %vm745_vm6, 0.0, %v746_v15 }
 0x22d   : > { %v2789_v43 = vunpack.i.h.bf16 %v2787_v8  ;;  %v2788_v48 = vunpack.i.l.bf16 %v2787_v8  ;;  %v2804_v14 = vunpack.i.h.bf16 %v2802_v22  ;;  %v2803_v27 = vunpack.i.l.bf16 %v2802_v22 }
 0x22e   : > { %2512 = vmatpush3.bf16.msra.mxu1 %v2873_v18 }
 0x22f   : > { %2496 = vmatmul.mubr.msk.bf16.gmra.mrb[4].mxu1 %vm3825_vm4, %v3869_v7  ;;  %2513 = vmatprep.subr.bf16.mxu1 %v2874_v3  ;;  %v1019_v42 = vsel %vm1008_vm2, %v998_v21, %v2788_v48  ;;  %v1020_v6 = vsel %vm1008_vm2, %v999_v26, %v2789_v43  ;;  %v1001_v38 = vsel %vm987_vm7, %v3769_v54, %v2804_v14  ;;  %v803_v54 = vsel %vm745_vm6, 0.0, %v767_v60 }
 0x230   : > { %v3882_v32 = vpack.c.bf16 %v1020_v6, %v1019_v42  ;;  %v2797_v33 = vpop.permute.xlu0 %2796  ;;  %v2812_v34 = vpop.permute.xlu1 %2811  ;;  %v1000_v47 = vsel %vm987_vm7, %v802_v63, %v2803_v27 }
 0x231   : > { %v2814_v23 = vunpack.i.h.bf16 %v2812_v34  ;;  %v2813_v36 = vunpack.i.l.bf16 %v2812_v34  ;;  %v2799_v40 = vunpack.i.h.bf16 %v2797_v33  ;;  %v2798_v20 = vunpack.i.l.bf16 %v2797_v33 }
 0x232   : > { %2514 = vmatpush3.bf16.msra.mxu1 %v2874_v3  ;;  %2499 = vmatprep.mubr.msk.bf16.mxu1 %vm3825_vm4, %v3882_v32  ;;  %v2878_v3 = vld [vmem:[#allocation7 + $0x38] sm:$0xff]  }
 0x233   : > { %2515 = vmatprep.subr.bf16.mxu1 %v2875_v12  ;;  %v1021_v58 = vsel %vm1008_vm2, %v1000_v47, %v2813_v36  ;;  %v1022_v0 = vsel %vm1008_vm2, %v1001_v38, %v2814_v23  ;;  %v1003_v10 = vsel %vm987_vm7, %v3781_v62, %v2799_v40  ;;  %v1002_v13 = vsel %vm987_vm7, %v803_v54, %v2798_v20  ;;  %v2880_v23 = vld [vmem:[#allocation7 + $0x88] sm:$0xff]   ;;  %v2882_v36 = vld [vmem:[#allocation7 + $0x98] sm:$0xff]   ;;  %v2885_v47 = vld [vmem:[#allocation7 + $0xb0] sm:$0xff]  }
 0x234   : > { %v3895_v29 = vpack.c.bf16 %v1022_v0, %v1021_v58  ;;  %v2807_v1 = vpop.permute.xlu0 %2806  ;;  %v2817_v4 = vpop.permute.xlu1 %2816  ;;  %v804_v62 = vsel %vm745_vm6, 0.0, %v770_v59  ;;  %v2884_v38 = vld [vmem:[#allocation7 + $0xa8] sm:$0xff]   ;;  %v2886_v40 = vld [vmem:[#allocation7 + $0xb8] sm:$0xff]  }
 0x235   : > { %v2809_v41 = vunpack.i.h.bf16 %v2807_v1  ;;  %v2808_v44 = vunpack.i.l.bf16 %v2807_v1  ;;  %v2819_v18 = vunpack.i.h.bf16 %v2817_v4  ;;  %v2818_v5 = vunpack.i.l.bf16 %v2817_v4 }
 0x236   : > { %2516 = vmatpush3.bf16.msra.mxu1 %v2875_v12 }
 0x237   : > { %2500 = vmatmul.mubr.msk.bf16.gmra.mrb[8].mxu1 %vm3825_vm4, %v3895_v29  ;;  %2517 = vmatprep.subr.bf16.mxu1 %v2876_v53  ;;  %v1023_v39 = vsel %vm1008_vm2, %v1002_v13, %v2808_v44  ;;  %v1024_v60 = vsel %vm1008_vm2, %v1003_v10, %v2809_v41  ;;  %v1005_v51 = vsel %vm987_vm7, %v3802_v35, %v2819_v18 }
 0x238   : > { %v3908_v24 = vpack.c.bf16 %v1024_v60, %v1023_v39  ;;  %v2822_v49 = vpop.permute.xlu1 %2821  ;;  %v2827_v52 = vpop.permute.xlu0 %2826  ;;  %v1004_v55 = vsel %vm987_vm7, %v804_v62, %v2818_v5  ;;  %v2903_v62 = vld [vmem:[%s3478_s16 + $0x10] sm:$0xff]  }
 0x239   : > { %v2824_v50 = vunpack.i.h.bf16 %v2822_v49  ;;  %v2823_v9 = vunpack.i.l.bf16 %v2822_v49  ;;  %v2829_v56 = vunpack.i.h.bf16 %v2827_v52  ;;  %v2828_v61 = vunpack.i.l.bf16 %v2827_v52 }
 0x23a   : > { %2518 = vmatpush3.bf16.msra.mxu1 %v2876_v53  ;;  %2503 = vmatprep.mubr.msk.bf16.mxu1 %vm3825_vm4, %v3908_v24 }
 0x23b   : > { %2519 = vmatprep.subr.bf16.mxu1 %v2877_v46  ;;  %v1025_v25 = vsel %vm1008_vm2, %v1004_v55, %v2823_v9  ;;  %v1026_v59 = vsel %vm1008_vm2, %v1005_v51, %v2824_v50  ;;  %v988_v26 = vsel %vm987_vm7, %v796_v2, %v2828_v61  ;;  %v989_v21 = vsel %vm987_vm7, %v3607_v28, %v2829_v56 }
 0x23c   : > { %v2136_v11 = vpack.c.bf16 %v1026_v59, %v1025_v25  ;;  %v2837_v35 = vpop.permute.xlu0 %2836  ;;  %v2832_v8 = vpop.permute.xlu1 %2831 }
 0x23d   : > { %v2839_v22 = vunpack.i.h.bf16 %v2837_v35  ;;  %v2838_v57 = vunpack.i.l.bf16 %v2837_v35  ;;  %v2834_v43 = vunpack.i.h.bf16 %v2832_v8  ;;  %v2833_v48 = vunpack.i.l.bf16 %v2832_v8 }
 0x23e   : > { %2520 = vmatpush3.bf16.msra.mxu1 %v2877_v46 }
 0x23f   : > { %2504 = vmatmul.mubr.msk.bf16.gmra.mrb[12].mxu1 %vm3825_vm4, %v2136_v11  ;;  %2521 = vmatprep.subr.bf16.mxu1 %v2878_v3  ;;  %v1007_v15 = vsel %vm987_vm7, %v3792_v30, %v2839_v22  ;;  %v1006_v14 = vsel %vm987_vm7, %v3795_v31, %v2838_v57  ;;  %v1009_v27 = vsel %vm1008_vm2, %v988_v26, %v2833_v48  ;;  %v2881_v31 = vld [vmem:[#allocation7 + $0x90] sm:$0xff]   ;;  %v2904_v57 = vld [vmem:[%s3478_s16 + $0x18] sm:$0xff]  }
 0x240   : > { %v1010_v12 = vsel %vm1008_vm2, %v989_v21, %v2834_v43  ;;  %v2842_v6 = vpop.permute.xlu1 %2841 }
 0x241   : > { %v2147_v42 = vpack.c.bf16 %v1010_v12, %v1009_v27  ;;  %v2844_v33 = vunpack.i.h.bf16 %v2842_v6  ;;  %v2843_v34 = vunpack.i.l.bf16 %v2842_v6 }
 0x242   : > { %2522 = vmatpush3.bf16.msra.mxu1 %v2878_v3 }
 0x243   : > { %2523 = vmatprep.mubr.msk.bf16.mxu1 %vm3825_vm4, %v2147_v42  ;;  %2539 = vmatprep.subr.bf16.mxu1 %v2879_v45  ;;  %v1028_v28 = vsel %vm1008_vm2, %v1007_v15, %v2844_v33  ;;  %v1027_v30 = vsel %vm1008_vm2, %v1006_v14, %v2843_v34 }
 0x244   : > { %v2200_v63 = vpack.c.bf16 %v1028_v28, %v1027_v30  ;;  %v2905_v30 = vld [vmem:[%s3478_s16 + $0x20] sm:$0xff]  }
 0x247   : > { %2524 = vmatmul.mubr.msk.bf16.vlgmr.msra.gmra.mrb[0].mxu1 %vm3825_vm4, %v3829_v19  ;;  %v2883_v19 = vld [vmem:[#allocation7 + $0xa0] sm:$0xff]  }
 0x248   : > { %2540 = vmatpush3.bf16.msra.mxu1 %v2879_v45  ;;  %2527 = vmatprep.mubr.msk.bf16.mxu1 %vm3825_vm4, %v3842_v37 }
 0x249   : > { %2541 = vmatprep.subr.bf16.mxu1 %v2880_v23 }
 0x24c   : > { %2542 = vmatpush3.bf16.msra.mxu1 %v2880_v23 }
 0x24d   : > { %2543 = vmatprep.subr.bf16.mxu1 %v2881_v31 }
 0x24f   : > { %2528 = vmatmul.mubr.msk.bf16.gmra.mrb[4].mxu1 %vm3825_vm4, %v3856_v16 }
 0x250   : > { %2544 = vmatpush3.bf16.msra.mxu1 %v2881_v31  ;;  %2531 = vmatprep.mubr.msk.bf16.mxu1 %vm3825_vm4, %v3869_v7 }
 0x251   : > { %2545 = vmatprep.subr.bf16.mxu1 %v2882_v36 }
 0x254   : > { %2546 = vmatpush3.bf16.msra.mxu1 %v2882_v36 }
 0x255   : > { %2547 = vmatprep.subr.bf16.mxu1 %v2883_v19 }
 0x257   : > { %2532 = vmatmul.mubr.msk.bf16.gmra.mrb[8].mxu1 %vm3825_vm4, %v3882_v32 }
 0x258   : > { %2548 = vmatpush3.bf16.msra.mxu1 %v2883_v19  ;;  %2535 = vmatprep.mubr.msk.bf16.mxu1 %vm3825_vm4, %v3895_v29 }
 0x259   : > { %2549 = vmatprep.subr.bf16.mxu1 %v2884_v38 }
 0x25c   : > { %2550 = vmatpush3.bf16.msra.mxu1 %v2884_v38 }
 0x25d   : > { %2551 = vmatprep.subr.bf16.mxu1 %v2885_v47 }
 0x25f   : > { %2536 = vmatmul.mubr.msk.bf16.gmra.mrb[12].mxu1 %vm3825_vm4, %v3908_v24 }
 0x260   : > { %2552 = vmatpush3.bf16.msra.mxu1 %v2885_v47  ;;  %2555 = vmatprep.mubr.msk.bf16.mxu1 %vm3825_vm4, %v3842_v37  ;;  %v2900_v37 = vld [vmem:[#allocation8 + $0x30] sm:$0xff]  }
 0x261   : > { %2553 = vmatprep.subr.bf16.mxu1 %v2886_v40  ;;  %2388 = vmatpush3.bf16.msra.mxu0 %v2900_v37  ;;  %v2907_v37 = vld [vmem:[%s3478_s16 + $0x30] sm:$0xff]  }
 0x264   : > { %2554 = vmatpush3.bf16.msra.mxu1 %v2886_v40  ;;  %v2906_v40 = vld [vmem:[%s3478_s16 + $0x28] sm:$0xff]  }
 0x267   : > { %2556 = vmatmul.mubr.msk.bf16.vlgmr.msra.gmra.mrb[0].mxu1 %vm3825_vm4, %v3856_v16  ;;  %v2901_v16 = vld [vmem:[#allocation8 + $0x78] sm:$0xff]  }
 0x268   : > { %2559 = vmatprep.mubr.msk.bf16.mxu1 %vm3825_vm4, %v3869_v7  ;;  %v2902_v7 = vld [vmem:[#allocation8 + $0x38] sm:$0xff]   ;;  %2389 = vmatprep.subr.bf16.mxu0 %v2901_v16 }
 0x269   : > { %2390 = vmatpush3.bf16.msra.mxu0 %v2902_v7  ;;  %v2908_v16 = vld [vmem:[%s3478_s16 + $0x38] sm:$0xff]   ;;  %v2909_v7 = vld [vmem:[%s3478_s16 + $0x40] sm:$0xff]   ;;  %s2261_s16 = sshll.u32 %s3138_s30, 4 }
 0x26a   : > { %s1950_s19 = sadd.s32 %s2261_s16, %s2239_s14 }
 0x26b   : > { %s2240_s6 = sshll.u32 %s1950_s19, 6 }
 0x26f   : > { %2560 = vmatmul.mubr.msk.bf16.gmra.mrb[4].mxu1 %vm3825_vm4, %v3882_v32  ;;  %v2202_v32 = vld [vmem:[%s4170_s21] ss:$0 sm:$0xff]  ;;  %s4031_s21 = scalar_lea.hbm %s4175_s12, %s2240_s6 }
 0x270   : > { %2563 = vmatprep.mubr.msk.bf16.mxu1 %vm3825_vm4, %v3895_v29 }
 0x277   : > { %2564 = vmatmul.mubr.msk.bf16.gmra.mrb[8].mxu1 %vm3825_vm4, %v3908_v24 }
 0x278   : > { %2567 = vmatprep.mubr.msk.bf16.mxu1 %vm3825_vm4, %v2136_v11 }
 0x27f   : > { %2568 = vmatmul.mubr.msk.bf16.gmra.mrb[12].mxu1 %vm3825_vm4, %v2200_v63 }
 0x33a   : > { %v2557_v20 = vpop.f32.mrb[0].mxu1 }
 0x33b   : > { %v1570_v53 = vadd.f32 %v2557_v20, %v2202_v32  ;;  %v1482_v58 = vpop.f32.mrb[1].mxu1  ;;  %v3995_v20 = vld [vmem:[%s4172_s18] ss:$0 sm:$0xff]  ;;  %s3164_s18 = smov [#allocation10]  }
 0x33c   : > { %v1568_v0 = vadd.f32 %v2202_v32, %v1482_v58  ;;  %v2558_v29 = vpop.f32.mrb[2].mxu1  ;;  %s3028_s20 = sshll.u32 %s3164_s18, 4  ;;  %s3029_s20 = int_to_ptr.vmem [resolvable:$false] %s3028_s20 }
 0x33d   : > { %v1571_v1 = vadd.f32 %v2558_v29, %v2202_v32  ;;  %v1485_v4 = vpop.f32.mrb[3].mxu1  ;;  %v1586_v54 = vmax.f32 %v1570_v53, 0.0  ;;  %s3030_s3 = scalar_lea.vmem %s3029_s20, 2048  ;;  %p3031_p13 = scmp.lt.s32.totalorder %s4033_s25, %s3029_s20 }
 0x33e   : > { %v1569_v17 = vadd.f32 %v2202_v32, %v1485_v4  ;;  %v1584_v44 = vmax.f32 %v1568_v0, 0.0  ;;  %p3032_p6 = scmp.lt.s32.totalorder %s3030_s3, %s3024_s1 }
 0x33f   : > { %v1587_v41 = vmax.f32 %v1571_v1, 0.0 }
 0x340   : > { %v1585_v10 = vmax.f32 %v1569_v17, 0.0  ;;  %p3033_p8 = por %p3032_p6, %p3031_p13 }
 0x341   : > { %v1601_v13 = vpack.c.bf16 %v1587_v41, %v1586_v54 }
 0x342   : > { %v1600_v18 = vpack.c.bf16 %v1585_v10, %v1584_v44  ;;  %v2561_v5 = vpop.f32.mrb[4].mxu1  ;;  %p3034_p12 = pnand %p3033_p8, %p3027_p5 }
 0x343   : > { %v1574_v46 = vadd.f32 %v2561_v5, %v2202_v32  ;;  %v1498_v39 = vpop.f32.mrb[5].mxu1 }
 0x344   : > { %v1572_v60 = vadd.f32 %v2202_v32, %v1498_v39  ;;  %v2562_v24 = vpop.f32.mrb[6].mxu1  ;;  %1776 = vmatmul.mubr.bf16.vlgmr.msra.gmra.mrb[20].mxu0 %v1600_v18 }
 0x345   : > { %v1575_v49 = vadd.f32 %v2562_v24, %v2202_v32  ;;  %v1501_v52 = vpop.f32.mrb[7].mxu1  ;;  %1783 = vmatprep.mubr.bf16.mxu0 %v2903_v62  ;;  %v1590_v9 = vmax.f32 %v1574_v46, 0.0 }
 0x346   : > { %v1573_v50 = vadd.f32 %v2202_v32, %v1501_v52  ;;  %v1588_v55 = vmax.f32 %v1572_v60, 0.0 }
 0x347   : > { %v1591_v51 = vmax.f32 %v1575_v49, 0.0 }
 0x348   : > { %v1589_v56 = vmax.f32 %v1573_v50, 0.0 }
 0x349   : > { %v1603_v61 = vpack.c.bf16 %v1591_v51, %v1590_v9 }
 0x34a   : > { %v1602_v3 = vpack.c.bf16 %v1589_v56, %v1588_v55  ;;  %v2565_v25 = vpop.f32.mrb[8].mxu1 }
 0x34b   : > { %v1578_v59 = vadd.f32 %v2565_v25, %v2202_v32  ;;  %v1514_v2 = vpop.f32.mrb[9].mxu1 }
 0x34c   : > { %v1576_v11 = vadd.f32 %v2202_v32, %v1514_v2  ;;  %v2566_v35 = vpop.f32.mrb[10].mxu1  ;;  %1784 = vmatmul.mubr.bf16.gmra.mrb[24].mxu0 %v1601_v13 }
 0x34d   : > { %v1579_v8 = vadd.f32 %v2566_v35, %v2202_v32  ;;  %v1517_v22 = vpop.f32.mrb[11].mxu1  ;;  %1791 = vmatprep.mubr.bf16.mxu0 %v2904_v57  ;;  %v1594_v48 = vmax.f32 %v1578_v59, 0.0 }
 0x34e   : > { %v1577_v43 = vadd.f32 %v2202_v32, %v1517_v22  ;;  %v1592_v21 = vmax.f32 %v1576_v11, 0.0 }
 0x34f   : > { %v1595_v26 = vmax.f32 %v1579_v8, 0.0 }
 0x350   : > { %v1593_v45 = vmax.f32 %v1577_v43, 0.0 }
 0x351   : > { %v1605_v15 = vpack.c.bf16 %v1595_v26, %v1594_v48 }
 0x352   : > { %v1604_v14 = vpack.c.bf16 %v1593_v45, %v1592_v21  ;;  %v2569_v27 = vpop.f32.mrb[12].mxu1 }
 0x353   : > { %v1582_v12 = vadd.f32 %v2569_v27, %v2202_v32  ;;  %v1530_v42 = vpop.f32.mrb[13].mxu1 }
 0x354   : > { %v1580_v6 = vadd.f32 %v2202_v32, %v1530_v42  ;;  %v2570_v33 = vpop.f32.mrb[14].mxu1  ;;  %1792 = vmatmul.mubr.bf16.gmra.mrb[28].mxu0 %v1602_v3 }
 0x355   : > { %v1583_v34 = vadd.f32 %v2570_v33, %v2202_v32  ;;  %v1533_v28 = vpop.f32.mrb[15].mxu1  ;;  %1799 = vmatprep.mubr.bf16.mxu0 %v2905_v30  ;;  %v1598_v23 = vmax.f32 %v1582_v12, 0.0 }
 0x356   : > { %v1581_v63 = vadd.f32 %v2202_v32, %v1533_v28  ;;  %v1596_v36 = vmax.f32 %v1580_v6, 0.0 }
 0x357   : > { %v1599_v31 = vmax.f32 %v1583_v34, 0.0 }
 0x358   : > { %v1597_v19 = vmax.f32 %v1581_v63, 0.0 }
 0x359   : > { %v1607_v38 = vpack.c.bf16 %v1599_v31, %v1598_v23 }
 0x35a   : > { %v1606_v47 = vpack.c.bf16 %v1597_v19, %v1596_v36 }
 0x35c   : > { %1800 = vmatmul.mubr.bf16.gmra.mrb[32].mxu0 %v1603_v61 }
 0x35d   : > { %1807 = vmatprep.mubr.bf16.mxu0 %v2906_v40 }
 0x364   : > { %1808 = vmatmul.mubr.bf16.gmra.mrb[36].mxu0 %v1604_v14 }
 0x365   : > { %1815 = vmatprep.mubr.bf16.mxu0 %v2907_v37 }
 0x36c   : > { %1816 = vmatmul.mubr.bf16.gmra.mrb[40].mxu0 %v1605_v15 }
 0x36d   : > { %1823 = vmatprep.mubr.bf16.mxu0 %v2908_v16 }
 0x374   : > { %1824 = vmatmul.mubr.bf16.gmra.mrb[44].mxu0 %v1606_v47 }
 0x375   : > { %1831 = vmatprep.mubr.bf16.mxu0 %v2909_v7 }
 0x37c   : > { %1832 = vmatmul.mubr.bf16.gmra.mrb[48].mxu0 %v1607_v38 }
 0x417   : > { %v2391_v32 = vpop.f32.mrb[20].mxu0 }
 0x418   : > { %v2392_v53 = vpop.f32.mrb[21].mxu0 }
 0x419   : > { %v2393_v58 = vadd.f32 %v2392_v53, %v2391_v32  ;;  %v2394_v0 = vpop.f32.mrb[22].mxu0 }
 0x41a   : > { %v2395_v29 = vpop.f32.mrb[23].mxu0 }
 0x41b   : > { %v1778_v1 = vadd.f32 %v2393_v58, %v3995_v20  ;;  %v2396_v4 = vadd.f32 %v2395_v29, %v2394_v0 }
 0x41d   : > { %v1781_v17 = vadd.f32 %v2396_v4, %v3995_v20  ;;  %v1840_v54 = vmax.f32 %v1778_v1, 0.0 }
 0x41f   : > { %v1841_v41 = vmax.f32 %v1781_v17, 0.0  ;;  %v2397_v44 = vpop.f32.mrb[24].mxu0 }
 0x420   : > { %v2398_v10 = vpop.f32.mrb[25].mxu0 }
 0x421   : > { %v2265_v13 = vpack.c.bf16 %v1841_v41, %v1840_v54  ;;  %v2399_v18 = vadd.f32 %v2398_v10, %v2397_v44  ;;  %v2400_v5 = vpop.f32.mrb[26].mxu0 }
 0x422   : > { %v2401_v46 = vpop.f32.mrb[27].mxu0 }
 0x423   : > { %2266 = vst [vmem:[%s4002_s23] sm:$0xff] %v2265_v13   ;;  %v1786_v39 = vadd.f32 %v2399_v18, %v3995_v20  ;;  %v2402_v60 = vadd.f32 %v2401_v46, %v2400_v5 }
 0x425   : > { %v1789_v24 = vadd.f32 %v2402_v60, %v3995_v20  ;;  %v1842_v49 = vmax.f32 %v1786_v39, 0.0 }
 0x427   : > { %v1843_v52 = vmax.f32 %v1789_v24, 0.0  ;;  %v2403_v62 = vpop.f32.mrb[28].mxu0 }
 0x428   : > { %v2404_v50 = vpop.f32.mrb[29].mxu0 }
 0x429   : > { %v2270_v9 = vpack.c.bf16 %v1843_v52, %v1842_v49  ;;  %v2405_v51 = vadd.f32 %v2404_v50, %v2403_v62  ;;  %v2406_v55 = vpop.f32.mrb[30].mxu0 }
 0x42a   : > { %v2407_v56 = vpop.f32.mrb[31].mxu0 }
 0x42b   : > { %2302 = vst [vmem:[%s4002_s23 + $0x8] sm:$0xff] %v2270_v9   ;;  %v1794_v61 = vadd.f32 %v2405_v51, %v3995_v20  ;;  %v2408_v3 = vadd.f32 %v2407_v56, %v2406_v55 }
 0x42d   : > { %v1797_v25 = vadd.f32 %v2408_v3, %v3995_v20  ;;  %v1844_v59 = vmax.f32 %v1794_v61, 0.0 }
 0x42f   : > { %v1845_v2 = vmax.f32 %v1797_v25, 0.0  ;;  %v2409_v11 = vpop.f32.mrb[32].mxu0 }
 0x430   : > { %v2410_v35 = vpop.f32.mrb[33].mxu0 }
 0x431   : > { %v2275_v8 = vpack.c.bf16 %v1845_v2, %v1844_v59  ;;  %v2411_v22 = vadd.f32 %v2410_v35, %v2409_v11  ;;  %v2412_v57 = vpop.f32.mrb[34].mxu0 }
 0x432   : > { %v2413_v43 = vpop.f32.mrb[35].mxu0 }
 0x433   : > { %2303 = vst [vmem:[%s4002_s23 + $0x10] sm:$0xff] %v2275_v8   ;;  %v1802_v48 = vadd.f32 %v2411_v22, %v3995_v20  ;;  %v2414_v26 = vadd.f32 %v2413_v43, %v2412_v57 }
 0x435   : > { %v1805_v21 = vadd.f32 %v2414_v26, %v3995_v20  ;;  %v1846_v45 = vmax.f32 %v1802_v48, 0.0 }
 0x437   : > { %v1847_v15 = vmax.f32 %v1805_v21, 0.0  ;;  %v2415_v14 = vpop.f32.mrb[36].mxu0 }
 0x438   : > { %v2416_v27 = vpop.f32.mrb[37].mxu0 }
 0x439   : > { %v2280_v12 = vpack.c.bf16 %v1847_v15, %v1846_v45  ;;  %v2417_v42 = vadd.f32 %v2416_v27, %v2415_v14  ;;  %v2418_v6 = vpop.f32.mrb[38].mxu0 }
 0x43a   : > { %v2419_v33 = vpop.f32.mrb[39].mxu0 }
 0x43b   : > { %2304 = vst [vmem:[%s4002_s23 + $0x18] sm:$0xff] %v2280_v12   ;;  %v1810_v34 = vadd.f32 %v2417_v42, %v3995_v20  ;;  %v2420_v28 = vadd.f32 %v2419_v33, %v2418_v6 }
 0x43d   : > { %v1813_v30 = vadd.f32 %v2420_v28, %v3995_v20  ;;  %v1848_v63 = vmax.f32 %v1810_v34, 0.0 }
 0x43f   : > { %v1849_v23 = vmax.f32 %v1813_v30, 0.0  ;;  %v2421_v31 = vpop.f32.mrb[40].mxu0 }
 0x440   : > { %v2422_v36 = vpop.f32.mrb[41].mxu0 }
 0x441   : > { %v2285_v19 = vpack.c.bf16 %v1849_v23, %v1848_v63  ;;  %v2423_v38 = vadd.f32 %v2422_v36, %v2421_v31  ;;  %v2424_v47 = vpop.f32.mrb[42].mxu0 }
 0x442   : > { %v2425_v40 = vpop.f32.mrb[43].mxu0 }
 0x443   : > { %2305 = vst [vmem:[%s4002_s23 + $0x20] sm:$0xff] %v2285_v19   ;;  %v1818_v37 = vadd.f32 %v2423_v38, %v3995_v20  ;;  %v2426_v16 = vadd.f32 %v2425_v40, %v2424_v47 }
 0x445   : > { %v1821_v7 = vadd.f32 %v2426_v16, %v3995_v20  ;;  %v1850_v32 = vmax.f32 %v1818_v37, 0.0 }
 0x447   : > { %v1851_v53 = vmax.f32 %v1821_v7, 0.0  ;;  %v2427_v58 = vpop.f32.mrb[44].mxu0 }
 0x448   : > { %v2428_v0 = vpop.f32.mrb[45].mxu0 }
 0x449   : > { %v2290_v29 = vpack.c.bf16 %v1851_v53, %v1850_v32  ;;  %v2429_v1 = vadd.f32 %v2428_v0, %v2427_v58  ;;  %v2430_v4 = vpop.f32.mrb[46].mxu0 }
 0x44a   : > { %v2431_v17 = vpop.f32.mrb[47].mxu0 }
 0x44b   : > { %2306 = vst [vmem:[%s4002_s23 + $0x28] sm:$0xff] %v2290_v29   ;;  %v1826_v54 = vadd.f32 %v2429_v1, %v3995_v20  ;;  %v2432_v41 = vadd.f32 %v2431_v17, %v2430_v4 }
 0x44d   : > { %v1829_v44 = vadd.f32 %v2432_v41, %v3995_v20  ;;  %v1852_v10 = vmax.f32 %v1826_v54, 0.0 }
 0x44f   : > { %v1853_v13 = vmax.f32 %v1829_v44, 0.0  ;;  %v2433_v18 = vpop.f32.mrb[48].mxu0 }
 0x450   : > { %v2434_v5 = vpop.f32.mrb[49].mxu0 }
 0x451   : > { %v2295_v46 = vpack.c.bf16 %v1853_v13, %v1852_v10  ;;  %v2435_v39 = vadd.f32 %v2434_v5, %v2433_v18  ;;  %v2436_v60 = vpop.f32.mrb[50].mxu0 }
 0x452   : > { %v2437_v24 = vpop.f32.mrb[51].mxu0 }
 0x453   : > { %2307 = vst [vmem:[%s4002_s23 + $0x30] sm:$0xff] %v2295_v46   ;;  %v1834_v49 = vadd.f32 %v2435_v39, %v3995_v20  ;;  %v2438_v52 = vadd.f32 %v2437_v24, %v2436_v60 }
 0x455   : > { %v1837_v62 = vadd.f32 %v2438_v52, %v3995_v20  ;;  %v1854_v50 = vmax.f32 %v1834_v49, 0.0 }
 0x457   : > { %v1855_v9 = vmax.f32 %v1837_v62, 0.0 }
 0x459   : > { %v2300_v51 = vpack.c.bf16 %v1855_v9, %v1854_v50 }
 0x45b   : > { %2308 = vst [vmem:[%s4002_s23 + $0x38] sm:$0xff] %v2300_v51  }
 0x45c   : > { %3037 = shalt.err (!%p3034_p12)
}
 0x45d   : > { %s3038_s4 = scalar_lea.hbm %s4031_s21, 1024  ;;  %s3042_s16 = scalar_lea.hbm %s4175_s12, 4096 }
 0x45e   : > { %p3039_p4 = scmp.ne.s32.totalorder %s4031_s21, %s3038_s4  ;;  %p3043_p0 = scmp.lt.u32.totalorder %s4031_s21, %s4175_s12 }
 0x45f   : > { %p3044_p1 = scmp.lt.u32.totalorder %s3042_s16, %s3038_s4  ;;  %p3046_p10 = scmp.lt.u32.totalorder %s3038_s4, %s4031_s21 }
 0x460   : > { %p3040_p7 = pnand %p3039_p4, %p4176_p2 }
 0x461   : > { %p3045_p11 = por %p3044_p1, %p3043_p0 }
 0x462   : > { %p3041_p3 = pneg %p3040_p7 }
 0x463   : > { %p3047_p9 = por %p3046_p10, %p3045_p11 }
 0x465   : > { %p3048_p5 = pnand %p3047_p9, %p3041_p3 }
 0x467   : > { %3051 = shalt.err (!%p3048_p5)
}
 0x468   : > { %s3165_s6 = smov 64   ;;  %s3166_s30 = smov 4  }
 0x469   : > { %2620 = dma.vmem_to_hbm [thread:$0]  (%p4176_p2), %s4033_s25, 1024, %s4031_s21, %s4038_s24, %s3165_s6, %s3165_s6, %s3166_s30  }
 0x46a PF: > { %s4177_s8 = sld [smem:[#allocation15_spill]]  ;;  %s4178_s1 = sld [smem:[#allocation19_spill]] }
 0x46b   : > { %p2647_p13 = scmp.ge.s32.totalorder %s3154_s11, 2 }
 0x470   : > { %s1968_s18 = sand.u32 1, %s4177_s8   ;;  %p4179_p6 = scmp.ne.s32.totalorder %s4178_s1, 0 }
 0x471   : > { %s1969_s20 = scalar_lea.sflag [#allocation4], %s1968_s18 }
 0x472   : > { %p2637_p8 = pnand %p2647_p13, %p4179_p6 }
 0x474   : > { %3109 = dma.done.wait (!%p2637_p8), %s1969_s20, 1024  }
 0x475   : > { %3111 = vsyncadd (!%p2637_p8), %s1969_s20, 4294966272  ;;  %s25_s11 = sadd.s32 1, %s3154_s11   ;;  %s4180_s24 = sld [smem:[#allocation16_spill]] }
 0x476   : > { %p22_p12 = scmp.ge.s32.totalorder %s25_s11, 6   ;;  %s4181_s25 = smov %s3122_s26 }
 0x477   : > { %s4182_s26 = smov %s3414_s27  ;;  %s4183_s27 = smov %s3130_s28 }
 0x478   : > { %s4184_s28 = smov %s3134_s29  ;;  %s4185_s29 = smov %s3409_s7 }
 0x479   : > { %s4186_s30 = smov %s3146_s9  ;;  %s4187_s8 = smov %s3150_s10 }
 0x47a   : > { %s4188_s9 = smov %s4191_s17  ;;  %s4189_s10 = smov %s4195_s22 }
 0x47b   :  { %24 = sbr.rel (!%p22_p12) target bundleno = 17 (0x11), region = 108 }
 0x482   :  { %1974 = vsyncpa [#allocation3], 1 }
 0x483   :  { %1976 = vsyncpa [#allocation3 + $0x1], 1 }
 0x484   :  { %1977 = vsyncpa [#allocation6], 1 }
 0x485   :  { %1978 = vsyncpa [#allocation9], 1 }
 0x486   :  { %1979 = vsyncpa [#allocation4], 1 }
 0x487   :  { %1981 = vsyncpa [#allocation4 + $0x1], 1 }

</bundles_post_ra>
